<compile_context>
chip_gen: v6e
topology: v6e:2x2x1
jax: 0.10.0
libtpu: 0.0.40
codegen_flags: <defaults>
</compile_context>

<pallas_src>
import functools

import jax
import jax.numpy as jnp
from jax.experimental import pallas as pl
from jax.experimental.pallas import tpu as pltpu

NEG_SLOPE = 0.01            # torch.nn.LeakyReLU default negative_slope
N_CLASSES = 10
N_CLASSES_PAD = 16          # one-hot K padded to 16 for the MXU
D_IN = 1 + N_CLASSES        # 11
D_H1, D_H2 = 256, 512
D_OUT = 784
D_OUT_PAD = 896             # 7 * 128, lane-dense output


def _leaky_relu(x):
    return jnp.where(x > 0, x, NEG_SLOPE * x)


def mlp_kernel(noise_ref, label_ref, w1n_ref, w1l_ref, b1_ref,
               w2_ref, b2_ref, w3_ref, b3_ref, out_ref, *, bf16_epilogue):
    noise = noise_ref[...]                               # (tm, 1)  f32
    lbl = label_ref[...]                                 # (tm, 1)  int32

    # ---- layer 1: [noise | one_hot(label)] @ W1 + b1.
    # Label term as a single small MXU matmul (K=16, exact one-hot in bf16);
    # noise column as a f32 VPU FMA.
    cls = jax.lax.broadcasted_iota(jnp.int32, (lbl.shape[0], N_CLASSES_PAD), 1)
    one_hot = (lbl == cls).astype(jnp.bfloat16)          # (tm, 16)
    h = noise * w1n_ref[...] + b1_ref[...]               # (tm, 256) f32
    h = h + jnp.dot(one_hot, w1l_ref[...],
                    preferred_element_type=jnp.float32)
    h = _leaky_relu(h)

    ep_dtype = jnp.bfloat16 if bf16_epilogue else jnp.float32

    # ---- layer 2: bf16 operands, f32 MXU accumulation; epilogue in ep_dtype.
    h = jnp.dot(h.astype(jnp.bfloat16), w2_ref[...],
                preferred_element_type=jnp.float32)
    h = _leaky_relu(h.astype(ep_dtype) + b2_ref[...].astype(ep_dtype))

    # ---- layer 3 (N padded to 896 lanes) + tanh; bf16 store.
    h = jnp.dot(h.astype(jnp.bfloat16), w3_ref[...],
                preferred_element_type=jnp.float32)
    h = jnp.tanh(h.astype(ep_dtype) + b3_ref[...].astype(ep_dtype))
    out_ref[...] = h.astype(out_ref.dtype)


def _cdiv(a, b):
    return (a + b - 1) // b


def _round_up(x, m):
    return _cdiv(x, m) * m


def _pick_tile(batch, batch_tile):
    """Batch tile: multiple of 16 rows, minimal padding, >=2 tiles when big."""
    if batch <= 16:
        n_tiles = 1
    else:
        # at least 2 tiles so v7x's two TensorCores both get work
        n_tiles = max(2, _cdiv(batch, batch_tile))
    return min(batch_tile, _round_up(_cdiv(batch, n_tiles), 16))


def _default_bf16_epilogue():
    # v5e has no bf16 VPU/EUP datapath; keep elementwise work in f32 there.
    try:
        kind = jax.devices()[0].device_kind.lower()
    except Exception:
        return True
    return "v5" not in kind


def g_forward(noise, label, params, *, batch_tile=512, out_dtype=jnp.float32,
              bf16_epilogue=None):
    """Forward pass of G.  noise: (B, 1) f32, label: (B,) int -> (B, 784)."""
    w1n, w1l, b1, w2, b2, w3, b3 = params
    B = noise.shape[0]
    if bf16_epilogue is None:
        bf16_epilogue = _default_bf16_epilogue()

    tm = _pick_tile(B, batch_tile)
    b_pad = _round_up(B, tm)

    noise = noise.astype(jnp.float32).reshape(B, 1)
    label = label.astype(jnp.int32).reshape(B, 1)
    if b_pad != B:
        noise = jnp.pad(noise, ((0, b_pad - B), (0, 0)))
        label = jnp.pad(label, ((0, b_pad - B), (0, 0)))

    flops = 2 * b_pad * (N_CLASSES_PAD * D_H1 + D_H1 * D_H2 + D_H2 * D_OUT_PAD)
    bytes_accessed = (
        b_pad * (4 + 4)                                     # noise + label
        + (w1n.size + b1.size + b2.size + b3.size) * 4      # f32 params
        + (w1l.size + w2.size + w3.size) * 2                # bf16 weights
        + b_pad * D_OUT_PAD * 2                             # bf16 output
    )

    def _const_spec(shape):
        # weights/biases: same block for every grid step -> VMEM-resident
        return pl.BlockSpec(shape, lambda i: (0, 0))

    kernel = functools.partial(mlp_kernel, bf16_epilogue=bf16_epilogue)

    out = pl.pallas_call(
        kernel,
        out_shape=jax.ShapeDtypeStruct((b_pad, D_OUT_PAD), jnp.bfloat16),
        grid_spec=pltpu.PrefetchScalarGridSpec(
            num_scalar_prefetch=0,
            grid=(b_pad // tm,),
            in_specs=[
                pl.BlockSpec((tm, 1), lambda i: (i, 0)),      # noise
                pl.BlockSpec((tm, 1), lambda i: (i, 0)),      # label
                _const_spec((1, D_H1)),                       # w1 noise row (f32)
                _const_spec((N_CLASSES_PAD, D_H1)),           # w1 label rows (bf16)
                _const_spec((1, D_H1)),                       # b1
                _const_spec((D_H1, D_H2)),                    # w2 (bf16)
                _const_spec((1, D_H2)),                       # b2
                _const_spec((D_H2, D_OUT_PAD)),               # w3 (bf16, padded)
                _const_spec((1, D_OUT_PAD)),                  # b3 (padded)
            ],
            out_specs=pl.BlockSpec((tm, D_OUT_PAD), lambda i: (i, 0)),
        ),
        compiler_params=pltpu.CompilerParams(
            dimension_semantics=("parallel",),
        ),
        cost_estimate=pl.CostEstimate(
            flops=flops,
            transcendentals=b_pad * D_OUT_PAD,
            bytes_accessed=bytes_accessed,
        ),
    )(noise, label, w1n, w1l, b1, w2, b2, w3, b3)

    # Strip batch padding and the 784 -> 896 lane padding; cast if needed.
    return out[:B, :D_OUT].astype(out_dtype)


def init_params(key):
    """torch.nn.Linear-style init (U[-1/sqrt(fan_in), 1/sqrt(fan_in)]).

    Weights are stored (in_features, out_features).  w1-label-rows / w2 / w3
    are cast to bf16; w1l is zero-padded 10 -> 16 rows, w3 / b3 are zero-padded
    to 896 output lanes.  Also returns f32 reference params.
    """
    dims = [(D_IN, D_H1), (D_H1, D_H2), (D_H2, D_OUT)]
    raw = []
    for fan_in, fan_out in dims:
        key, kw, kb = jax.random.split(key, 3)
        bound = 1.0 / float(fan_in) ** 0.5
        w = jax.random.uniform(kw, (fan_in, fan_out), jnp.float32, -bound, bound)
        b = jax.random.uniform(kb, (1, fan_out), jnp.float32, -bound, bound)
        raw.append((w, b))
    (w1, b1), (w2, b2), (w3, b3) = raw

    w1n = w1[0:1, :]                                   # (1, 256)  noise row
    w1l = jnp.pad(w1[1:, :],                           # (16, 256) label rows
                  ((0, N_CLASSES_PAD - N_CLASSES), (0, 0))).astype(jnp.bfloat16)
    w3p = jnp.pad(w3, ((0, 0), (0, D_OUT_PAD - D_OUT))).astype(jnp.bfloat16)
    b3p = jnp.pad(b3, ((0, 0), (0, D_OUT_PAD - D_OUT)))

    params = (w1n, w1l, b1, w2.astype(jnp.bfloat16), b2, w3p, b3p)
    ref_params = (w1, b1, w2, b2, w3, b3)
    return params, ref_params


def g_forward_ref(noise, label, ref_params):
    """Pure-JAX f32 reference matching the PyTorch module."""
    w1, b1, w2, b2, w3, b3 = ref_params
    one_hot = jax.nn.one_hot(label, N_CLASSES, dtype=jnp.float32)
    x = jnp.concatenate([noise.astype(jnp.float32), one_hot], axis=1)
    h = _leaky_relu(x @ w1 + b1)
    h = _leaky_relu(h @ w2 + b2)
    return jnp.tanh(h @ w3 + b3)


if __name__ == "__main__":
    key = jax.random.PRNGKey(0)
    k_params, k_noise, k_label = jax.random.split(key, 3)

    params, ref_params = init_params(k_params)

    B = 8
    noise = jax.random.normal(k_noise, (B, 1), dtype=jnp.float32)
    label = jax.random.randint(k_label, (B,), 0, N_CLASSES, dtype=jnp.int32)

    out = g_forward(noise, label, params)
    out = jax.block_until_ready(out)

    assert out.shape == (B, D_OUT), out.shape
    assert out.dtype == jnp.float32, out.dtype
    assert bool(jnp.all(jnp.abs(out) <= 1.0))           # tanh range

    ref = g_forward_ref(noise, label, ref_params)
    max_err = float(jnp.max(jnp.abs(out - ref)))
    assert max_err < 5e-2, f"max abs err vs f32 reference: {max_err}"

    print("KERNEL_OK")
</pallas_src>

<mosaic_0001>
module attributes {stable_mosaic.version = 11 : i64} {
  func.func @mlp_kernel(%arg0: i32, %arg1: memref<16x1xf32, #tpu.memory_space<vmem>>, %arg2: memref<16x1xi32, #tpu.memory_space<vmem>>, %arg3: memref<1x256xf32, #tpu.memory_space<vmem>>, %arg4: memref<16x256xbf16, #tpu.memory_space<vmem>>, %arg5: memref<1x256xf32, #tpu.memory_space<vmem>>, %arg6: memref<256x512xbf16, #tpu.memory_space<vmem>>, %arg7: memref<1x512xf32, #tpu.memory_space<vmem>>, %arg8: memref<512x896xbf16, #tpu.memory_space<vmem>>, %arg9: memref<1x896xf32, #tpu.memory_space<vmem>>, %arg10: memref<16x896xbf16, #tpu.memory_space<vmem>>) attributes {dimension_semantics = [#tpu.dimension_semantics<parallel>], iteration_bounds = array<i64: 1>, scalar_prefetch = 0 : i64, scratch_operands = 0 : i64, tpu.core_type = #tpu.core_type<tc>, window_params = [{transform_indices = @transform_0, window_bounds = array<i64: 16, 1>}, {transform_indices = @transform_1, window_bounds = array<i64: 16, 1>}, {pipeline_mode = #tpu.pipeline_mode<synchronous>, transform_indices = @transform_2, window_bounds = array<i64: 1, 256>}, {pipeline_mode = #tpu.pipeline_mode<synchronous>, transform_indices = @transform_3, window_bounds = array<i64: 16, 256>}, {pipeline_mode = #tpu.pipeline_mode<synchronous>, transform_indices = @transform_4, window_bounds = array<i64: 1, 256>}, {pipeline_mode = #tpu.pipeline_mode<synchronous>, transform_indices = @transform_5, window_bounds = array<i64: 256, 512>}, {pipeline_mode = #tpu.pipeline_mode<synchronous>, transform_indices = @transform_6, window_bounds = array<i64: 1, 512>}, {pipeline_mode = #tpu.pipeline_mode<synchronous>, transform_indices = @transform_7, window_bounds = array<i64: 512, 896>}, {pipeline_mode = #tpu.pipeline_mode<synchronous>, transform_indices = @transform_8, window_bounds = array<i64: 1, 896>}, {transform_indices = @transform_9, window_bounds = array<i64: 16, 896>}]} {
    %c0 = arith.constant 0 : index
    %c0_0 = arith.constant 0 : index
    %0 = vector.load %arg1[%c0, %c0_0] : memref<16x1xf32, #tpu.memory_space<vmem>>, vector<16x1xf32>
    %c0_1 = arith.constant 0 : index
    %c0_2 = arith.constant 0 : index
    %1 = vector.load %arg2[%c0_1, %c0_2] : memref<16x1xi32, #tpu.memory_space<vmem>>, vector<16x1xi32>
    %2 = tpu.iota {dimensions = array<i32: 1>} : vector<16x16xi32>
    %3 = vector.broadcast %1 : vector<16x1xi32> to vector<16x16xi32>
    %4 = arith.cmpi eq, %3, %2 : vector<16x16xi32>
    %5 = arith.extui %4 : vector<16x16xi1> to vector<16x16xi32>
    %6 = arith.sitofp %5 : vector<16x16xi32> to vector<16x16xf32>
    %7 = arith.truncf %6 : vector<16x16xf32> to vector<16x16xbf16>
    %c0_3 = arith.constant 0 : index
    %c0_4 = arith.constant 0 : index
    %8 = vector.load %arg3[%c0_3, %c0_4] : memref<1x256xf32, #tpu.memory_space<vmem>>, vector<1x256xf32>
    %9 = vector.broadcast %0 : vector<16x1xf32> to vector<16x256xf32>
    %10 = vector.broadcast %8 : vector<1x256xf32> to vector<16x256xf32>
    %11 = arith.mulf %9, %10 : vector<16x256xf32>
    %c0_5 = arith.constant 0 : index
    %c0_6 = arith.constant 0 : index
    %12 = vector.load %arg5[%c0_5, %c0_6] : memref<1x256xf32, #tpu.memory_space<vmem>>, vector<1x256xf32>
    %13 = vector.broadcast %12 : vector<1x256xf32> to vector<16x256xf32>
    %14 = arith.addf %11, %13 : vector<16x256xf32>
    %c0_7 = arith.constant 0 : index
    %c0_8 = arith.constant 0 : index
    %15 = vector.load %arg4[%c0_7, %c0_8] : memref<16x256xbf16, #tpu.memory_space<vmem>>, vector<16x256xbf16>
    %cst = arith.constant dense<0.000000e+00> : vector<16x256xf32>
    %16 = tpu.matmul %7, %15, %cst {dimension_numbers = #tpu.dot_dimension_numbers<[1], [0], [0], [1], [0, 0, 1, 1], [], []>} : vector<16x16xbf16>, vector<16x256xbf16>, vector<16x256xf32> -> vector<16x256xf32>
    %17 = arith.addf %14, %16 : vector<16x256xf32>
    %cst_9 = arith.constant 0.000000e+00 : f32
    %18 = vector.broadcast %cst_9 : f32 to vector<16x256xf32>
    %19 = arith.cmpf ogt, %17, %18 : vector<16x256xf32>
    %cst_10 = arith.constant 0.00999999977 : f32
    %20 = vector.broadcast %cst_10 : f32 to vector<16x256xf32>
    %21 = arith.mulf %20, %17 : vector<16x256xf32>
    %22 = arith.select %19, %17, %21 : vector<16x256xi1>, vector<16x256xf32>
    %23 = arith.truncf %22 : vector<16x256xf32> to vector<16x256xbf16>
    %c0_11 = arith.constant 0 : index
    %c0_12 = arith.constant 0 : index
    %24 = vector.load %arg6[%c0_11, %c0_12] : memref<256x512xbf16, #tpu.memory_space<vmem>>, vector<256x512xbf16>
    %cst_13 = arith.constant dense<0.000000e+00> : vector<16x512xf32>
    %25 = tpu.matmul %23, %24, %cst_13 {dimension_numbers = #tpu.dot_dimension_numbers<[1], [0], [0], [1], [0, 0, 1, 1], [], []>} : vector<16x256xbf16>, vector<256x512xbf16>, vector<16x512xf32> -> vector<16x512xf32>
    %26 = arith.truncf %25 : vector<16x512xf32> to vector<16x512xbf16>
    %c0_14 = arith.constant 0 : index
    %c0_15 = arith.constant 0 : index
    %27 = vector.load %arg7[%c0_14, %c0_15] : memref<1x512xf32, #tpu.memory_space<vmem>>, vector<1x512xf32>
    %28 = arith.truncf %27 : vector<1x512xf32> to vector<1x512xbf16>
    %29 = vector.broadcast %28 : vector<1x512xbf16> to vector<16x512xbf16>
    %30 = arith.addf %26, %29 : vector<16x512xbf16>
    %cst_16 = arith.constant 0.000000e+00 : bf16
    %31 = vector.broadcast %cst_16 : bf16 to vector<16x512xbf16>
    %32 = arith.cmpf ogt, %30, %31 : vector<16x512xbf16>
    %cst_17 = arith.constant 1.000980e-02 : bf16
    %33 = vector.broadcast %cst_17 : bf16 to vector<16x512xbf16>
    %34 = arith.mulf %33, %30 : vector<16x512xbf16>
    %35 = arith.select %32, %30, %34 : vector<16x512xi1>, vector<16x512xbf16>
    %c0_18 = arith.constant 0 : index
    %c0_19 = arith.constant 0 : index
    %36 = vector.load %arg8[%c0_18, %c0_19] : memref<512x896xbf16, #tpu.memory_space<vmem>>, vector<512x896xbf16>
    %cst_20 = arith.constant dense<0.000000e+00> : vector<16x896xf32>
    %37 = tpu.matmul %35, %36, %cst_20 {dimension_numbers = #tpu.dot_dimension_numbers<[1], [0], [0], [1], [0, 0, 1, 1], [], []>} : vector<16x512xbf16>, vector<512x896xbf16>, vector<16x896xf32> -> vector<16x896xf32>
    %38 = arith.truncf %37 : vector<16x896xf32> to vector<16x896xbf16>
    %c0_21 = arith.constant 0 : index
    %c0_22 = arith.constant 0 : index
    %39 = vector.load %arg9[%c0_21, %c0_22] : memref<1x896xf32, #tpu.memory_space<vmem>>, vector<1x896xf32>
    %40 = arith.truncf %39 : vector<1x896xf32> to vector<1x896xbf16>
    %41 = vector.broadcast %40 : vector<1x896xbf16> to vector<16x896xbf16>
    %42 = arith.addf %38, %41 : vector<16x896xbf16>
    %43 = math.tanh %42 : vector<16x896xbf16>
    %c0_23 = arith.constant 0 : index
    %c0_24 = arith.constant 0 : index
    %44 = vector.load %arg10[%c0_23, %c0_24] : memref<16x896xbf16, #tpu.memory_space<vmem>>, vector<16x896xbf16>
    tpu.vector_store %arg10[%c0_23, %c0_24], %43 {strides = array<i32>} : memref<16x896xbf16, #tpu.memory_space<vmem>>, vector<16x896xbf16>,
    return
  }
  func.func @transform_0(%arg0: i32) -> (i32, i32) {
    %c0_i32 = arith.constant 0 : i32
    %c0_i32_0 = arith.constant 0 : i32
    return %arg0, %c0_i32 : i32, i32
  }
  func.func @transform_1(%arg0: i32) -> (i32, i32) {
    %c0_i32 = arith.constant 0 : i32
    %c0_i32_0 = arith.constant 0 : i32
    return %arg0, %c0_i32 : i32, i32
  }
  func.func @transform_2(%arg0: i32) -> (i32, i32) {
    %c0_i32 = arith.constant 0 : i32
    %c0_i32_0 = arith.constant 0 : i32
    %c0_i32_1 = arith.constant 0 : i32
    return %c0_i32, %c0_i32_0 : i32, i32
  }
  func.func @transform_3(%arg0: i32) -> (i32, i32) {
    %c0_i32 = arith.constant 0 : i32
    %c0_i32_0 = arith.constant 0 : i32
    %c0_i32_1 = arith.constant 0 : i32
    return %c0_i32, %c0_i32_0 : i32, i32
  }
  func.func @transform_4(%arg0: i32) -> (i32, i32) {
    %c0_i32 = arith.constant 0 : i32
    %c0_i32_0 = arith.constant 0 : i32
    %c0_i32_1 = arith.constant 0 : i32
    return %c0_i32, %c0_i32_0 : i32, i32
  }
  func.func @transform_5(%arg0: i32) -> (i32, i32) {
    %c0_i32 = arith.constant 0 : i32
    %c0_i32_0 = arith.constant 0 : i32
    %c0_i32_1 = arith.constant 0 : i32
    return %c0_i32, %c0_i32_0 : i32, i32
  }
  func.func @transform_6(%arg0: i32) -> (i32, i32) {
    %c0_i32 = arith.constant 0 : i32
    %c0_i32_0 = arith.constant 0 : i32
    %c0_i32_1 = arith.constant 0 : i32
    return %c0_i32, %c0_i32_0 : i32, i32
  }
  func.func @transform_7(%arg0: i32) -> (i32, i32) {
    %c0_i32 = arith.constant 0 : i32
    %c0_i32_0 = arith.constant 0 : i32
    %c0_i32_1 = arith.constant 0 : i32
    return %c0_i32, %c0_i32_0 : i32, i32
  }
  func.func @transform_8(%arg0: i32) -> (i32, i32) {
    %c0_i32 = arith.constant 0 : i32
    %c0_i32_0 = arith.constant 0 : i32
    %c0_i32_1 = arith.constant 0 : i32
    return %c0_i32, %c0_i32_0 : i32, i32
  }
  func.func @transform_9(%arg0: i32) -> (i32, i32) {
    %c0_i32 = arith.constant 0 : i32
    %c0_i32_0 = arith.constant 0 : i32
    return %arg0, %c0_i32 : i32, i32
  }
}

</mosaic_0001>

<bundles_post_ra>
// kernel: tpu_custom_call.1
= control target key start
LH: loop header
LB: loop body
LE: loop exit
PB: predicated region body
PF: predicated region fallthrough
CT: control target
= control target key end

     0   :  { %14 = vsyncpa [#allocation3], 0  ;;  %s3704_s0 = inlined_call_operand.vmem [shape: f32[16,1], index: 0, kind: input, shape index: {}]   ;;  %s3705_s1 = inlined_call_operand.vmem [shape: s32[16,1], index: 1, kind: input, shape index: {}]   ;;  %s3706_s2 = inlined_call_operand.vmem [shape: f32[1,256], index: 2, kind: input, shape index: {}]   ;;  %s3707_s3 = inlined_call_operand.vmem [shape: bf16[16,256], index: 3, kind: input, shape index: {}]   ;;  %s3708_s4 = inlined_call_operand.vmem [shape: f32[1,256], index: 4, kind: input, shape index: {}]   ;;  %s3709_s5 = inlined_call_operand.hbm [shape: bf16[256,512], index: 5, kind: input, shape index: {}]   ;;  %s3710_s6 = inlined_call_operand.vmem [shape: f32[1,512], index: 6, kind: input, shape index: {}]   ;;  %s3711_s7 = inlined_call_operand.hbm [shape: bf16[512,896], index: 7, kind: input, shape index: {}]   ;;  %s3712_s8 = inlined_call_operand.vmem [shape: f32[1,896], index: 8, kind: input, shape index: {}]   ;;  %s3713_s9 = inlined_call_operand.hbm [shape: bf16[16,896], index: 9, kind: output, shape index: {}]  }
   0x1   :  { %15 = vsyncpa [#allocation6], 0 }
   0x2   :  { %16 = vsyncpa [#allocation4], 0  ;;  %s3525_s30 = smov [#allocation2]  }
   0x3   :  { %s32_s10 = sshll.u32 %s3525_s30, 4  ;;  %s33_s10 = int_to_ptr.vmem [resolvable:$true] %s32_s10 }
   0x4   :  { %s3467_s11 = scalar_lea.vmem %s33_s10, 8192  ;;  %p3472_p1 = scmp.lt.s32.totalorder %s33_s10, %s33_s10 }
   0x5   :  { %p3468_p0 = scmp.ne.s32.totalorder %s33_s10, %s3467_s11  ;;  %p3473_p2 = scmp.lt.s32.totalorder %s3467_s11, %s3467_s11 }
   0x7   :  { %p3474_p3 = por %p3473_p2, %p3472_p1 }
   0x9   :  { %p3475_p4 = pnand %p3474_p3, %p3468_p0 }
   0xb   :  { %3478 = shalt.err (!%p3475_p4)
}
   0xc   :  { %s3526_s12 = smov 256   ;;  %s3527_s13 = smov 16  }
   0xd   :  { %38 = dma.hbm_to_vmem [thread:$0]  %s3709_s5, 8192, %s33_s10, [#allocation3], %s3526_s12, %s3526_s12, %s3527_s13  }
   0xe   :  { %s3528_s16 = smov [#allocation5]  }
   0xf   :  { %s46_s17 = sshll.u32 %s3528_s16, 4  ;;  %s47_s17 = int_to_ptr.vmem [resolvable:$true] %s46_s17 }
  0x10   :  { %s3487_s18 = scalar_lea.vmem %s47_s17, 28672  ;;  %p3492_p6 = scmp.lt.s32.totalorder %s47_s17, %s47_s17 }
  0x11   :  { %p3488_p5 = scmp.ne.s32.totalorder %s47_s17, %s3487_s18  ;;  %p3493_p7 = scmp.lt.s32.totalorder %s3487_s18, %s3487_s18 }
  0x13   :  { %p3494_p8 = por %p3493_p7, %p3492_p6 }
  0x15   :  { %p3495_p9 = pnand %p3494_p8, %p3488_p5 }
  0x17   :  { %3498 = shalt.err (!%p3495_p9)
}
  0x18   :  { %s3529_s19 = smov 448   ;;  %s3530_s20 = smov 28  }
  0x19   :  { %52 = dma.hbm_to_vmem [thread:$0]  %s3711_s7, 28672, %s47_s17, [#allocation6], %s3529_s19, %s3529_s19, %s3530_s20  }
  0x1a   :  { %3519 = dma.done.wait [#allocation3], 8192  }
  0x1b   :  { %3520 = vsyncadd [#allocation3], 4294959104 }
  0x1c   :  { %3521 = dma.done.wait [#allocation6], 28672  }
  0x1d   :  { %3522 = vsyncadd [#allocation6], 4294938624  ;;  %v3531_v0 = vmov 0   ;;  %v65_v1 = vld [vmem:[%s3705_s1] sm:$0xff]  ;;  %v66_v2 = vld [vmem:[%s3705_s1 + $0x8] sm:$0xff]  ;;  %v67_v33 = vlaneseq  ;;  %v3532_v37 = vmov 0.0  }
  0x1e   :  { %3024 = vset.pattern.permute.xlu0 %v3531_v0  ;;  %172 = vmatprep.mubr.bf16.mxu0 %v3531_v0  ;;  %v3026_v3 = vld [vmem:[%s3707_s3 + $0x4] ss:$8 sps:$4 sm:$0xff]   ;;  %v3028_v4 = vld [vmem:[%s3707_s3] ss:$8 sps:$4 sm:$0xff]   ;;  %vm136_vm2 = vcmask 130048  }
  0x1f   :  { %3025 = vset.pattern.permute.xlu1 %v3531_v0  ;;  %70 = vperm.xlu0 %3024, %v65_v1   ;;  %v63_v5 = vld [vmem:[%s3704_s0] sm:$0xff]  ;;  %v3033_v7 = vld [vmem:[#allocation2 + $0xec] ss:$16 sps:$4 sm:$0xff]   ;;  %v68_v34 = vand.u32 127, %v67_v33  ;;  %v3031_v40 = vld [vmem:[#allocation2 + $0xe8] ss:$16 sps:$4 sm:$0xff]  }
  0x20   :  { %154 = vmatprep.subr.bf16.mxu0 %v3026_v3  ;;  %v3029_v6 = vld [vmem:[#allocation2 + $0xe4] ss:$16 sps:$4 sm:$0xff]   ;;  %85 = vperm.xlu1 %3025, %v63_v5   ;;  %v3034_v8 = vld [vmem:[#allocation2 + $0xe0] ss:$16 sps:$4 sm:$0xff]   ;;  %v64_v9 = vld [vmem:[%s3704_s0 + $0x8] sm:$0xff] }
  0x21   :  { %155 = vmatpush1.bf16.msra.mxu0 %v3028_v4  ;;  %585 = vmatprep.subr.bf16.mxu1 %v3029_v6  ;;  %v3035_v10 = vld [vmem:[#allocation2 + $0xc4] ss:$16 sps:$4 sm:$0xff]   ;;  %v3040_v11 = vld [vmem:[#allocation2 + $0xc0] ss:$16 sps:$4 sm:$0xff]   ;;  %v3039_v42 = vld [vmem:[#allocation2 + $0xcc] ss:$16 sps:$4 sm:$0xff]  }
  0x22   :  { %628 = vmatprep.subr.bf16.mxu0 %v3033_v7  ;;  %586 = vmatpush1.bf16.msra.mxu1 %v3034_v8  ;;  %v3041_v12 = vld [vmem:[#allocation2 + $0xa4] ss:$16 sps:$4 sm:$0xff]   ;;  %v3046_v13 = vld [vmem:[#allocation2 + $0xa0] ss:$16 sps:$4 sm:$0xff]   ;;  %v3037_v43 = vld [vmem:[#allocation2 + $0xc8] ss:$16 sps:$4 sm:$0xff]  }
  0x23   :  { %73 = vperm.xlu0 %3024, %v66_v2   ;;  %587 = vmatprep.subr.bf16.mxu1 %v3035_v10  ;;  %v3047_v14 = vld [vmem:[#allocation2 + $0x84] ss:$16 sps:$4 sm:$0xff]   ;;  %v3052_v15 = vld [vmem:[#allocation2 + $0x80] ss:$16 sps:$4 sm:$0xff]   ;;  %v3045_v44 = vld [vmem:[#allocation2 + $0xac] ss:$16 sps:$4 sm:$0xff]  }
  0x24   :  { %90 = vperm.xlu1 %3025, %v64_v9   ;;  %v3053_v16 = vld [vmem:[#allocation2 + $0x64] ss:$16 sps:$4 sm:$0xff]   ;;  %v3058_v17 = vld [vmem:[#allocation2 + $0x60] ss:$16 sps:$4 sm:$0xff]   ;;  %v3043_v45 = vld [vmem:[#allocation2 + $0xa8] ss:$16 sps:$4 sm:$0xff]  }
  0x25   :  { %v3059_v18 = vld [vmem:[#allocation2 + $0x44] ss:$16 sps:$4 sm:$0xff]   ;;  %v3064_v19 = vld [vmem:[#allocation2 + $0x40] ss:$16 sps:$4 sm:$0xff]   ;;  %v3051_v46 = vld [vmem:[#allocation2 + $0x8c] ss:$16 sps:$4 sm:$0xff]  }
  0x26   :  { %588 = vmatpush1.bf16.msra.mxu1 %v3040_v11  ;;  %v3065_v20 = vld [vmem:[#allocation2 + $0x24] ss:$16 sps:$4 sm:$0xff]   ;;  %v3070_v21 = vld [vmem:[#allocation2 + $0x20] ss:$16 sps:$4 sm:$0xff]   ;;  %v3049_v47 = vld [vmem:[#allocation2 + $0x88] ss:$16 sps:$4 sm:$0xff]  }
  0x27   :  { %589 = vmatprep.subr.bf16.mxu1 %v3041_v12  ;;  %v3071_v22 = vld [vmem:[#allocation2 + $0x4] ss:$16 sps:$4 sm:$0xff]   ;;  %v3076_v23 = vld [vmem:[#allocation2] ss:$16 sps:$4 sm:$0xff]   ;;  %v3057_v48 = vld [vmem:[#allocation2 + $0x6c] ss:$16 sps:$4 sm:$0xff]  }
  0x28   :  { %v3077_v24 = vld [vmem:[#allocation2 + $0x1e4] ss:$16 sps:$4 sm:$0xff]   ;;  %v3082_v25 = vld [vmem:[#allocation2 + $0x1e0] ss:$16 sps:$4 sm:$0xff]   ;;  %v3055_v49 = vld [vmem:[#allocation2 + $0x68] ss:$16 sps:$4 sm:$0xff]  }
  0x29   :  { %v3083_v26 = vld [vmem:[#allocation2 + $0x1c4] ss:$16 sps:$4 sm:$0xff]   ;;  %v3088_v27 = vld [vmem:[#allocation2 + $0x1c0] ss:$16 sps:$4 sm:$0xff]   ;;  %v3063_v50 = vld [vmem:[#allocation2 + $0x4c] ss:$16 sps:$4 sm:$0xff]  }
  0x2a   :  { %590 = vmatpush1.bf16.msra.mxu1 %v3046_v13  ;;  %v3089_v28 = vld [vmem:[#allocation2 + $0x1a4] ss:$16 sps:$4 sm:$0xff]   ;;  %v3094_v29 = vld [vmem:[#allocation2 + $0x1a0] ss:$16 sps:$4 sm:$0xff]   ;;  %v3061_v51 = vld [vmem:[#allocation2 + $0x48] ss:$16 sps:$4 sm:$0xff]  }
  0x2b   :  { %591 = vmatprep.subr.bf16.mxu1 %v3047_v14  ;;  %v3095_v30 = vld [vmem:[#allocation2 + $0x184] ss:$16 sps:$4 sm:$0xff]   ;;  %v3100_v31 = vld [vmem:[#allocation2 + $0x180] ss:$16 sps:$4 sm:$0xff]   ;;  %v3069_v52 = vld [vmem:[#allocation2 + $0x2c] ss:$16 sps:$4 sm:$0xff]  }
  0x2c   :  { %v3101_v32 = vld [vmem:[#allocation2 + $0x164] ss:$16 sps:$4 sm:$0xff]   ;;  %v3067_v53 = vld [vmem:[#allocation2 + $0x28] ss:$16 sps:$4 sm:$0xff]   ;;  %v3075_v54 = vld [vmem:[#allocation2 + $0xc] ss:$16 sps:$4 sm:$0xff]  }
  0x2d   :  { %v3073_v55 = vld [vmem:[#allocation2 + $0x8] ss:$16 sps:$4 sm:$0xff]   ;;  %v3081_v56 = vld [vmem:[#allocation2 + $0x1ec] ss:$16 sps:$4 sm:$0xff]   ;;  %v3106_v2 = vld [vmem:[#allocation2 + $0x160] ss:$16 sps:$4 sm:$0xff]  }
  0x2e   :  { %592 = vmatpush1.bf16.msra.mxu1 %v3052_v15  ;;  %v3079_v57 = vld [vmem:[#allocation2 + $0x1e8] ss:$16 sps:$4 sm:$0xff]   ;;  %v3087_v58 = vld [vmem:[#allocation2 + $0x1cc] ss:$16 sps:$4 sm:$0xff]   ;;  %v3107_v3 = vld [vmem:[#allocation2 + $0x144] ss:$16 sps:$4 sm:$0xff]  }
  0x2f   :  { %593 = vmatprep.subr.bf16.mxu1 %v3053_v16  ;;  %v3085_v59 = vld [vmem:[#allocation2 + $0x1c8] ss:$16 sps:$4 sm:$0xff]   ;;  %v3093_v60 = vld [vmem:[#allocation2 + $0x1ac] ss:$16 sps:$4 sm:$0xff]   ;;  %v3112_v6 = vld [vmem:[#allocation2 + $0x140] ss:$16 sps:$4 sm:$0xff]  }
  0x30   :  { %v3091_v61 = vld [vmem:[#allocation2 + $0x1a8] ss:$16 sps:$4 sm:$0xff]   ;;  %v3099_v62 = vld [vmem:[#allocation2 + $0x18c] ss:$16 sps:$4 sm:$0xff]   ;;  %v3113_v7 = vld [vmem:[#allocation2 + $0x124] ss:$16 sps:$4 sm:$0xff]  }
  0x31   :  { %v3097_v63 = vld [vmem:[#allocation2 + $0x188] ss:$16 sps:$4 sm:$0xff]   ;;  %v3105_v0 = vld [vmem:[#allocation2 + $0x16c] ss:$16 sps:$4 sm:$0xff]   ;;  %v3118_v10 = vld [vmem:[#allocation2 + $0x120] ss:$16 sps:$4 sm:$0xff]  }
  0x32   :  { %594 = vmatpush1.bf16.msra.mxu1 %v3058_v17  ;;  %v3103_v1 = vld [vmem:[#allocation2 + $0x168] ss:$16 sps:$4 sm:$0xff]   ;;  %v3111_v4 = vld [vmem:[#allocation2 + $0x14c] ss:$16 sps:$4 sm:$0xff]   ;;  %v3119_v11 = vld [vmem:[#allocation2 + $0x104] ss:$16 sps:$4 sm:$0xff]  }
  0x33   :  { %595 = vmatprep.subr.bf16.mxu1 %v3059_v18  ;;  %v3109_v5 = vld [vmem:[#allocation2 + $0x148] ss:$16 sps:$4 sm:$0xff]   ;;  %v3117_v8 = vld [vmem:[#allocation2 + $0x12c] ss:$16 sps:$4 sm:$0xff]   ;;  %v3124_v14 = vld [vmem:[#allocation2 + $0x100] ss:$16 sps:$4 sm:$0xff]  }
  0x34   :  { %v3115_v9 = vld [vmem:[#allocation2 + $0x128] ss:$16 sps:$4 sm:$0xff]   ;;  %v3123_v13 = vld [vmem:[#allocation2 + $0x10c] ss:$16 sps:$4 sm:$0xff]   ;;  %v3613_v17 = vshrl.u32 %v67_v33, 7 }
  0x35   :  { %v3121_v12 = vld [vmem:[#allocation2 + $0x108] ss:$16 sps:$4 sm:$0xff]  }
  0x36   :  { %596 = vmatpush1.bf16.msra.mxu1 %v3064_v19  ;;  %v3127_v15 = vld [vmem:[#allocation5 + $0x18c] ss:$28 sps:$4 sm:$0xff]   ;;  %v3616_v18 = vsub.s32 1, %v3613_v17  ;;  %v3619_v19 = vsub.s32 0, %v3613_v17 }
  0x37   :  { %597 = vmatprep.subr.bf16.mxu1 %v3065_v20  ;;  %v3130_v16 = vld [vmem:[#allocation5 + $0x50c] ss:$28 sps:$4 sm:$0xff]   ;;  %v82_v20 = vld [vmem:[%s3706_s2] sm:$0x3] }
  0x3a   :  { %598 = vmatpush1.bf16.msra.mxu1 %v3070_v21 }
  0x3b   :  { %599 = vmatprep.subr.bf16.mxu1 %v3071_v22  ;;  %v101_v22 = vrot.slane %v82_v20, %v3616_v18 }
  0x3e   :  { %600 = vmatpush1.bf16.msra.mxu1 %v3076_v23  ;;  %v97_v23 = vrot.slane %v82_v20, %v3619_v19  ;;  %v3172_v20 = vld [vmem:[#allocation5 + $0x384] ss:$28 sps:$4 sm:$0xff]  }
  0x3f   :  { %601 = vmatprep.subr.bf16.mxu1 %v3077_v24  ;;  %v108_v24 = vld [vmem:[%s3708_s4] sm:$0x3] }
  0x42   :  { %602 = vmatpush2.bf16.msra.mxu1 %v3082_v25 }
  0x43   :  { %603 = vmatprep.subr.bf16.mxu1 %v3083_v26  ;;  %v117_v26 = vrot.slane %v108_v24, %v3616_v18 }
  0x46   :  { %604 = vmatpush2.bf16.msra.mxu1 %v3088_v27 }
  0x47   :  { %605 = vmatprep.subr.bf16.mxu1 %v3089_v28 }
  0x4a   :  { %606 = vmatpush2.bf16.msra.mxu1 %v3094_v29  ;;  %v113_v29 = vrot.slane %v108_v24, %v3619_v19  ;;  %v3178_v24 = vld [vmem:[#allocation5 + $0x6cc] ss:$28 sps:$4 sm:$0xff]  }
  0x4b   :  { %607 = vmatprep.subr.bf16.mxu1 %v3095_v30 }
  0x4e   :  { %608 = vmatpush2.bf16.msra.mxu1 %v3100_v31 }
  0x4f   :  { %609 = vmatprep.subr.bf16.mxu1 %v3101_v32 }
  0x52   :  { %610 = vmatpush2.bf16.msra.mxu1 %v3106_v2  ;;  %v3143_v2 = vld [vmem:[#allocation5 + $0xe0] ss:$28 sps:$4 sm:$0xff]  }
  0x53   :  { %611 = vmatprep.subr.bf16.mxu1 %v3107_v3  ;;  %v3146_v3 = vld [vmem:[#allocation5 + $0x460] ss:$28 sps:$4 sm:$0xff]  }
  0x56   :  { %612 = vmatpush2.bf16.msra.mxu1 %v3112_v6  ;;  %v3149_v6 = vld [vmem:[#allocation5 + $0xa8] ss:$28 sps:$4 sm:$0xff]  }
  0x57   :  { %613 = vmatprep.subr.bf16.mxu1 %v3113_v7  ;;  %v3152_v7 = vld [vmem:[#allocation5 + $0x428] ss:$28 sps:$4 sm:$0xff]  }
  0x5a   :  { %614 = vmatpush2.bf16.msra.mxu1 %v3118_v10  ;;  %v3155_v10 = vld [vmem:[#allocation5 + $0x70] ss:$28 sps:$4 sm:$0xff]  }
  0x5b   :  { %615 = vmatprep.subr.bf16.mxu1 %v3119_v11  ;;  %v3158_v11 = vld [vmem:[#allocation5 + $0x3f0] ss:$28 sps:$4 sm:$0xff]  }
  0x5e   :  { %616 = vmatpush2.bf16.msra.mxu1 %v3124_v14  ;;  %v3161_v14 = vld [vmem:[#allocation5 + $0x38] ss:$28 sps:$4 sm:$0xff]  }
  0x5f   :  { %2153 = vmatprep.subr.bf16.mxu1 %v3127_v15  ;;  %v3164_v15 = vld [vmem:[#allocation5 + $0x3b8] ss:$28 sps:$4 sm:$0xff]  }
  0x9a   :  { %v71_v35 = vpop.permute.xlu0 %70 }
  0x9b   :  { %vm75_vm0 = vcmp.eq.s32.totalorder %v71_v35, %v68_v34  ;;  %v86_v21 = vpop.permute.xlu1 %85 }
  0x9c   :  { %v2670_v38 = vsel %vm75_vm0, 1.0, %v3532_v37  ;;  %v105_v25 = vmul.f32 %v101_v22, %v86_v21  ;;  %v104_v27 = vmul.f32 %v97_v23, %v86_v21  ;;  %v3167_v21 = vld [vmem:[#allocation5] ss:$28 sps:$4 sm:$0xff]  }
  0x9e   :  { %v74_v36 = vpop.permute.xlu0 %73  ;;  %v121_v31 = vadd.f32 %v117_v26, %v105_v25  ;;  %v120_v32 = vadd.f32 %v113_v29, %v104_v27  ;;  %v3173_v25 = vld [vmem:[#allocation5 + $0x348] ss:$28 sps:$4 sm:$0xff]   ;;  %v3181_v27 = vld [vmem:[#allocation5 + $0x314] ss:$28 sps:$4 sm:$0xff]  }
  0x9f   :  { %vm76_vm1 = vcmp.eq.s32.totalorder %v74_v36, %v68_v34  ;;  %v91_v28 = vpop.permute.xlu1 %90 }
  0xa0   :  { %v2671_v39 = vsel %vm76_vm1, 1.0, %v3532_v37  ;;  %v106_v30 = vmul.f32 %v97_v23, %v91_v28  ;;  %v107_v34 = vmul.f32 %v101_v22, %v91_v28  ;;  %v3170_v22 = vld [vmem:[#allocation5 + $0x380] ss:$28 sps:$4 sm:$0xff]   ;;  %v3175_v23 = vld [vmem:[#allocation5 + $0x34c] ss:$28 sps:$4 sm:$0xff]  }
  0xa1   :  { %v81_v41 = vpack.c.bf16 %v2671_v39, %v2670_v38  ;;  %v3184_v28 = vld [vmem:[#allocation5 + $0x694] ss:$28 sps:$4 sm:$0xff]  }
  0xa2   :  { %v122_v37 = vadd.f32 %v113_v29, %v106_v30  ;;  %v3179_v29 = vld [vmem:[#allocation5 + $0x310] ss:$28 sps:$4 sm:$0xff]  }
  0xa3   :  { %2674 = vmatmul.mubr.msk.bf16.vlgmr.msra.gmra.mxu0 %vm136_vm2, %v81_v41  ;;  %v123_v41 = vadd.f32 %v117_v26, %v107_v34  ;;  %v3176_v26 = vld [vmem:[#allocation5 + $0x6c8] ss:$28 sps:$4 sm:$0xff]   ;;  %v3182_v30 = vld [vmem:[#allocation5 + $0x690] ss:$28 sps:$4 sm:$0xff]   ;;  %v3188_v34 = vld [vmem:[#allocation5 + $0x658] ss:$28 sps:$4 sm:$0xff]  }
  0xa4   :  { %629 = vmatpush1.bf16.msra.mxu0 %v3031_v40 }
  0xa5   :  { %630 = vmatprep.subr.bf16.mxu0 %v3039_v42 }
  0xa8   :  { %631 = vmatpush1.bf16.msra.mxu0 %v3037_v43 }
  0xa9   :  { %632 = vmatprep.subr.bf16.mxu0 %v3045_v44 }
  0xac   :  { %633 = vmatpush1.bf16.msra.mxu0 %v3043_v45 }
  0xad   :  { %634 = vmatprep.subr.bf16.mxu0 %v3051_v46 }
  0xb0   :  { %635 = vmatpush1.bf16.msra.mxu0 %v3049_v47 }
  0xb1   :  { %636 = vmatprep.subr.bf16.mxu0 %v3057_v48 }
  0xb4   :  { %637 = vmatpush1.bf16.msra.mxu0 %v3055_v49 }
  0xb5   :  { %638 = vmatprep.subr.bf16.mxu0 %v3063_v50 }
  0xb8   :  { %639 = vmatpush1.bf16.msra.mxu0 %v3061_v51 }
  0xb9   :  { %640 = vmatprep.subr.bf16.mxu0 %v3069_v52 }
  0xbc   :  { %641 = vmatpush1.bf16.msra.mxu0 %v3067_v53  ;;  %v3125_v53 = vld [vmem:[#allocation5 + $0x188] ss:$28 sps:$4 sm:$0xff]  }
  0xbd   :  { %642 = vmatprep.subr.bf16.mxu0 %v3075_v54  ;;  %v3128_v54 = vld [vmem:[#allocation5 + $0x508] ss:$28 sps:$4 sm:$0xff]  }
  0xc0   :  { %643 = vmatpush1.bf16.msra.mxu0 %v3073_v55 }
  0xc1   :  { %644 = vmatprep.subr.bf16.mxu0 %v3081_v56  ;;  %v3133_v56 = vld [vmem:[#allocation5 + $0x154] ss:$28 sps:$4 sm:$0xff]  }
  0xc4   :  { %645 = vmatpush2.bf16.msra.mxu0 %v3079_v57  ;;  %v3136_v57 = vld [vmem:[#allocation5 + $0x4d4] ss:$28 sps:$4 sm:$0xff]  }
  0xc5   :  { %646 = vmatprep.subr.bf16.mxu0 %v3087_v58  ;;  %v3131_v58 = vld [vmem:[#allocation5 + $0x150] ss:$28 sps:$4 sm:$0xff]  }
  0xc8   :  { %647 = vmatpush2.bf16.msra.mxu0 %v3085_v59  ;;  %v3134_v59 = vld [vmem:[#allocation5 + $0x4d0] ss:$28 sps:$4 sm:$0xff]  }
  0xc9   :  { %648 = vmatprep.subr.bf16.mxu0 %v3093_v60  ;;  %v3139_v60 = vld [vmem:[#allocation5 + $0x11c] ss:$28 sps:$4 sm:$0xff]  }
  0xcc   :  { %649 = vmatpush2.bf16.msra.mxu0 %v3091_v61  ;;  %v3142_v61 = vld [vmem:[#allocation5 + $0x49c] ss:$28 sps:$4 sm:$0xff]  }
  0xcd   :  { %650 = vmatprep.subr.bf16.mxu0 %v3099_v62  ;;  %v3137_v62 = vld [vmem:[#allocation5 + $0x118] ss:$28 sps:$4 sm:$0xff]  }
  0xd0   :  { %651 = vmatpush2.bf16.msra.mxu0 %v3097_v63  ;;  %v3140_v63 = vld [vmem:[#allocation5 + $0x498] ss:$28 sps:$4 sm:$0xff]  }
  0xd1   :  { %652 = vmatprep.subr.bf16.mxu0 %v3105_v0  ;;  %v3145_v0 = vld [vmem:[#allocation5 + $0xe4] ss:$28 sps:$4 sm:$0xff]  }
  0xd4   :  { %653 = vmatpush2.bf16.msra.mxu0 %v3103_v1  ;;  %v3148_v1 = vld [vmem:[#allocation5 + $0x464] ss:$28 sps:$4 sm:$0xff]  }
  0xd5   :  { %654 = vmatprep.subr.bf16.mxu0 %v3111_v4  ;;  %v3151_v4 = vld [vmem:[#allocation5 + $0xac] ss:$28 sps:$4 sm:$0xff]  }
  0xd8   :  { %655 = vmatpush2.bf16.msra.mxu0 %v3109_v5  ;;  %v3154_v5 = vld [vmem:[#allocation5 + $0x42c] ss:$28 sps:$4 sm:$0xff]  }
  0xd9   :  { %656 = vmatprep.subr.bf16.mxu0 %v3117_v8  ;;  %v3157_v8 = vld [vmem:[#allocation5 + $0x74] ss:$28 sps:$4 sm:$0xff]  }
  0xdc   :  { %657 = vmatpush2.bf16.msra.mxu0 %v3115_v9  ;;  %v3160_v9 = vld [vmem:[#allocation5 + $0x3f4] ss:$28 sps:$4 sm:$0xff]  }
  0xdd   :  { %658 = vmatprep.subr.bf16.mxu0 %v3123_v13  ;;  %v3166_v13 = vld [vmem:[#allocation5 + $0x3bc] ss:$28 sps:$4 sm:$0xff]  }
  0xe0   :  { %659 = vmatpush2.bf16.msra.mxu0 %v3121_v12  ;;  %v3163_v12 = vld [vmem:[#allocation5 + $0x3c] ss:$28 sps:$4 sm:$0xff]  }
  0xe1   :  { %2196 = vmatprep.subr.bf16.mxu0 %v3130_v16  ;;  %v3169_v16 = vld [vmem:[#allocation5 + $0x4] ss:$28 sps:$4 sm:$0xff]  }
 0x163   :  { %v174_v33 = vpop.f32.mrf.mxu0 }
 0x164   :  { %v183_v38 = vadd.f32 %v174_v33, %v120_v32  ;;  %v3190_v32 = vld [vmem:[#allocation5 + $0x65c] ss:$28 sps:$4 sm:$0xff]  }
 0x165   :  { %v176_v35 = vpop.f32.mrf.mxu0  ;;  %v3185_v33 = vld [vmem:[#allocation5 + $0x2d8] ss:$28 sps:$4 sm:$0xff]  }
 0x166   :  { %v184_v36 = vadd.f32 %v176_v35, %v121_v31  ;;  %v191_v46 = vmul.f32 0.01, %v183_v38  ;;  %vm187_vm5 = vcmp.gt.f32.partialorder %v183_v38, 0.0  ;;  %v3187_v31 = vld [vmem:[#allocation5 + $0x2dc] ss:$28 sps:$4 sm:$0xff]  }
 0x167   :  { %v178_v39 = vpop.f32.mrf.mxu0  ;;  %v3193_v35 = vld [vmem:[#allocation5 + $0x2a4] ss:$28 sps:$4 sm:$0xff]  }
 0x168   :  { %v185_v40 = vadd.f32 %v178_v39, %v122_v37  ;;  %v192_v43 = vmul.f32 0.01, %v184_v36  ;;  %vm188_vm4 = vcmp.gt.f32.partialorder %v184_v36, 0.0  ;;  %v195_v52 = vsel %vm187_vm5, %v183_v38, %v191_v46  ;;  %v3191_v37 = vld [vmem:[#allocation5 + $0x2a0] ss:$28 sps:$4 sm:$0xff]  }
 0x169   :  { %v180_v42 = vpop.f32.mrf.mxu0  ;;  %v3194_v38 = vld [vmem:[#allocation5 + $0x620] ss:$28 sps:$4 sm:$0xff]   ;;  %v3199_v39 = vld [vmem:[#allocation5 + $0x26c] ss:$28 sps:$4 sm:$0xff]  }
 0x16a   :  { %vm189_vm3 = vcmp.gt.f32.partialorder %v185_v40, 0.0  ;;  %v193_v44 = vmul.f32 0.01, %v185_v40  ;;  %v186_v45 = vadd.f32 %v180_v42, %v123_v41  ;;  %v196_v49 = vsel %vm188_vm4, %v184_v36, %v192_v43  ;;  %v3196_v36 = vld [vmem:[#allocation5 + $0x624] ss:$28 sps:$4 sm:$0xff]  }
 0x16b   :  { %v3197_v41 = vld [vmem:[#allocation5 + $0x268] ss:$28 sps:$4 sm:$0xff]   ;;  %v3205_v43 = vld [vmem:[#allocation5 + $0x234] ss:$28 sps:$4 sm:$0xff]  }
 0x16c   :  { %v194_v47 = vmul.f32 0.01, %v186_v45  ;;  %vm190_vm6 = vcmp.gt.f32.partialorder %v186_v45, 0.0  ;;  %v197_v48 = vsel %vm189_vm3, %v185_v40, %v193_v44  ;;  %v3202_v40 = vld [vmem:[#allocation5 + $0x5ec] ss:$28 sps:$4 sm:$0xff]  }
 0x16d   :  { %v199_v55 = vpack.c.bf16 %v197_v48, %v195_v52  ;;  %v3200_v42 = vld [vmem:[#allocation5 + $0x5e8] ss:$28 sps:$4 sm:$0xff]   ;;  %v3208_v44 = vld [vmem:[#allocation5 + $0x5b4] ss:$28 sps:$4 sm:$0xff]   ;;  %v3214_v48 = vld [vmem:[#allocation5 + $0x57c] ss:$28 sps:$4 sm:$0xff]  }
 0x16e   :  { %v198_v50 = vsel %vm190_vm6, %v186_v45, %v194_v47  ;;  %v3203_v45 = vld [vmem:[#allocation5 + $0x230] ss:$28 sps:$4 sm:$0xff]   ;;  %v3211_v47 = vld [vmem:[#allocation5 + $0x1fc] ss:$28 sps:$4 sm:$0xff]   ;;  %v3220_v52 = vld [vmem:[#allocation5 + $0x544] ss:$28 sps:$4 sm:$0xff]  }
 0x16f   :  { %v200_v51 = vpack.c.bf16 %v198_v50, %v196_v49  ;;  %v3206_v46 = vld [vmem:[#allocation5 + $0x5b0] ss:$28 sps:$4 sm:$0xff]   ;;  %v3209_v49 = vld [vmem:[#allocation5 + $0x1f8] ss:$28 sps:$4 sm:$0xff]  }
 0x170   :  { %v3212_v50 = vld [vmem:[#allocation5 + $0x578] ss:$28 sps:$4 sm:$0xff]  }
 0x171   :  { %617 = vmatprep.mubr.bf16.mxu1 %v200_v51  ;;  %660 = vmatprep.mubr.bf16.mxu0 %v200_v51  ;;  %v3217_v51 = vld [vmem:[#allocation5 + $0x1c4] ss:$28 sps:$4 sm:$0xff]  }
 0x172   :  { %618 = vmatmul.mubr.bf16.vlgmr.msra.gmra.mxu1 %v199_v55  ;;  %661 = vmatmul.mubr.bf16.vlgmr.msra.gmra.mxu0 %v199_v55  ;;  %v3223_v55 = vld [vmem:[#allocation5 + $0x194] ss:$28 sps:$4 sm:$0xff]  }
 0x173   :  { %2154 = vmatpush1.bf16.msra.mxu1 %v3125_v53  ;;  %2197 = vmatpush1.bf16.msra.mxu0 %v3128_v54  ;;  %v3215_v53 = vld [vmem:[#allocation5 + $0x1c0] ss:$28 sps:$4 sm:$0xff]  }
 0x174   :  { %2155 = vmatprep.subr.bf16.mxu1 %v3133_v56  ;;  %2198 = vmatprep.subr.bf16.mxu0 %v3136_v57  ;;  %v3218_v54 = vld [vmem:[#allocation5 + $0x540] ss:$28 sps:$4 sm:$0xff]   ;;  %v3226_v56 = vld [vmem:[#allocation5 + $0x514] ss:$28 sps:$4 sm:$0xff]   ;;  %v687_v57 = vsub.s32 2, %v3613_v17 }
 0x177   :  { %2156 = vmatpush1.bf16.msra.mxu1 %v3131_v58  ;;  %2199 = vmatpush1.bf16.msra.mxu0 %v3134_v59  ;;  %v675_v58 = vld [vmem:[%s3710_s6] sm:$0xf]  ;;  %v691_v59 = vsub.s32 3, %v3613_v17 }
 0x178   :  { %2157 = vmatprep.subr.bf16.mxu1 %v3139_v60  ;;  %2200 = vmatprep.subr.bf16.mxu0 %v3142_v61  ;;  %v680_v60 = vrot.slane %v675_v58, %v3619_v19  ;;  %v688_v61 = vrot.slane %v675_v58, %v687_v57 }
 0x17b   :  { %2158 = vmatpush1.bf16.msra.mxu1 %v3137_v62  ;;  %2201 = vmatpush1.bf16.msra.mxu0 %v3140_v63  ;;  %v684_v62 = vrot.slane %v675_v58, %v3616_v18  ;;  %v692_v63 = vrot.slane %v675_v58, %v691_v59  ;;  %v3253_v58 = vld [vmem:[#allocation5 + $0x7c] ss:$28 sps:$4 sm:$0xff]  }
 0x17c   :  { %2159 = vmatprep.subr.bf16.mxu1 %v3145_v0  ;;  %2202 = vmatprep.subr.bf16.mxu0 %v3148_v1  ;;  %v697_v0 = vpack.c.bf16 %v680_v60, %v680_v60  ;;  %v699_v1 = vpack.c.bf16 %v688_v61, %v688_v61  ;;  %v3256_v60 = vld [vmem:[#allocation5 + $0x3fc] ss:$28 sps:$4 sm:$0xff]  }
 0x17d   :  { %v3251_v61 = vld [vmem:[#allocation5 + $0x78] ss:$28 sps:$4 sm:$0xff]  }
 0x17f   :  { %2160 = vmatpush1.bf16.msra.mxu1 %v3143_v2  ;;  %2203 = vmatpush1.bf16.msra.mxu0 %v3146_v3  ;;  %v698_v2 = vpack.c.bf16 %v684_v62, %v684_v62  ;;  %v700_v3 = vpack.c.bf16 %v692_v63, %v692_v63  ;;  %v3254_v62 = vld [vmem:[#allocation5 + $0x3f8] ss:$28 sps:$4 sm:$0xff]   ;;  %v3259_v63 = vld [vmem:[#allocation5 + $0x44] ss:$28 sps:$4 sm:$0xff]  }
 0x180   :  { %2161 = vmatprep.subr.bf16.mxu1 %v3151_v4  ;;  %2204 = vmatprep.subr.bf16.mxu0 %v3154_v5  ;;  %v702_v4 = vpack.i.b16 %v697_v0, %v697_v0  ;;  %v716_v5 = vpack.i.b16 %v699_v1, %v699_v1  ;;  %v3262_v0 = vld [vmem:[#allocation5 + $0x3c4] ss:$28 sps:$4 sm:$0xff]  }
 0x181   :  { %v3257_v1 = vld [vmem:[#allocation5 + $0x40] ss:$28 sps:$4 sm:$0xff]  }
 0x183   :  { %2162 = vmatpush1.bf16.msra.mxu1 %v3149_v6  ;;  %2205 = vmatpush1.bf16.msra.mxu0 %v3152_v7 }
 0x184   :  { %2163 = vmatprep.subr.bf16.mxu1 %v3157_v8  ;;  %2206 = vmatprep.subr.bf16.mxu0 %v3160_v9  ;;  %v709_v8 = vpack.i.b16 %v698_v2, %v698_v2  ;;  %v723_v9 = vpack.i.b16 %v700_v3, %v700_v3  ;;  %v3260_v2 = vld [vmem:[#allocation5 + $0x3c0] ss:$28 sps:$4 sm:$0xff]   ;;  %v3265_v3 = vld [vmem:[#allocation5 + $0xc] ss:$28 sps:$4 sm:$0xff]  }
 0x187   :  { %2164 = vmatpush1.bf16.msra.mxu1 %v3155_v10  ;;  %2207 = vmatpush1.bf16.msra.mxu0 %v3158_v11 }
 0x188   :  { %2165 = vmatprep.subr.bf16.mxu1 %v3163_v12  ;;  %2208 = vmatprep.subr.bf16.mxu0 %v3166_v13  ;;  %v707_v12 = vrot.slane %v702_v4, %v3619_v19  ;;  %v721_v13 = vrot.slane %v716_v5, %v3619_v19  ;;  %v3268_v4 = vld [vmem:[#allocation5 + $0x38c] ss:$28 sps:$4 sm:$0xff]  }
 0x189   :  { %v3263_v5 = vld [vmem:[#allocation5 + $0x8] ss:$28 sps:$4 sm:$0xff]  }
 0x18b   :  { %2166 = vmatpush1.bf16.msra.mxu1 %v3161_v14  ;;  %2209 = vmatpush1.bf16.msra.mxu0 %v3164_v15 }
 0x18c   :  { %2167 = vmatprep.subr.bf16.mxu1 %v3169_v16  ;;  %2210 = vmatprep.subr.bf16.mxu0 %v3172_v20 }
 0x18f   :  { %2168 = vmatpush1.bf16.msra.mxu1 %v3167_v21  ;;  %2211 = vmatpush1.bf16.msra.mxu0 %v3170_v22  ;;  %v714_v21 = vrot.slane %v709_v8, %v3619_v19  ;;  %v728_v22 = vrot.slane %v723_v9, %v3619_v19  ;;  %v3274_v8 = vld [vmem:[#allocation5 + $0x6d4] ss:$28 sps:$4 sm:$0xff]  }
 0x190   :  { %2169 = vmatprep.subr.bf16.mxu1 %v3175_v23  ;;  %2212 = vmatprep.subr.bf16.mxu0 %v3178_v24  ;;  %v3269_v9 = vld [vmem:[#allocation5 + $0x350] ss:$28 sps:$4 sm:$0xff]  }
 0x193   :  { %2170 = vmatpush2.bf16.msra.mxu1 %v3173_v25  ;;  %2213 = vmatpush2.bf16.msra.mxu0 %v3176_v26 }
 0x194   :  { %2171 = vmatprep.subr.bf16.mxu1 %v3181_v27  ;;  %2214 = vmatprep.subr.bf16.mxu0 %v3184_v28 }
 0x197   :  { %2172 = vmatpush2.bf16.msra.mxu1 %v3179_v29  ;;  %2215 = vmatpush2.bf16.msra.mxu0 %v3182_v30 }
 0x198   :  { %2173 = vmatprep.subr.bf16.mxu1 %v3187_v31  ;;  %2216 = vmatprep.subr.bf16.mxu0 %v3190_v32 }
 0x19b   :  { %2174 = vmatpush2.bf16.msra.mxu1 %v3185_v33  ;;  %2217 = vmatpush2.bf16.msra.mxu0 %v3188_v34 }
 0x19c   :  { %2175 = vmatprep.subr.bf16.mxu1 %v3193_v35  ;;  %2218 = vmatprep.subr.bf16.mxu0 %v3196_v36  ;;  %v3221_v35 = vld [vmem:[#allocation5 + $0x190] ss:$28 sps:$4 sm:$0xff]  }
 0x19d   :  { %v3224_v36 = vld [vmem:[#allocation5 + $0x510] ss:$28 sps:$4 sm:$0xff]  }
 0x19f   :  { %2176 = vmatpush2.bf16.msra.mxu1 %v3191_v37  ;;  %2219 = vmatpush2.bf16.msra.mxu0 %v3194_v38 }
 0x1a0   :  { %2177 = vmatprep.subr.bf16.mxu1 %v3199_v39  ;;  %2220 = vmatprep.subr.bf16.mxu0 %v3202_v40 }
 0x1a3   :  { %2178 = vmatpush2.bf16.msra.mxu1 %v3197_v41  ;;  %2221 = vmatpush2.bf16.msra.mxu0 %v3200_v42  ;;  %v3229_v41 = vld [vmem:[#allocation5 + $0x15c] ss:$28 sps:$4 sm:$0xff]  }
 0x1a4   :  { %2179 = vmatprep.subr.bf16.mxu1 %v3205_v43  ;;  %2222 = vmatprep.subr.bf16.mxu0 %v3208_v44  ;;  %v3232_v42 = vld [vmem:[#allocation5 + $0x4dc] ss:$28 sps:$4 sm:$0xff]  }
 0x1a5   :  { %v3227_v43 = vld [vmem:[#allocation5 + $0x158] ss:$28 sps:$4 sm:$0xff]  }
 0x1a6   :  { %v3230_v44 = vld [vmem:[#allocation5 + $0x4d8] ss:$28 sps:$4 sm:$0xff]  }
 0x1a7   :  { %2180 = vmatpush2.bf16.msra.mxu1 %v3203_v45  ;;  %2223 = vmatpush2.bf16.msra.mxu0 %v3206_v46  ;;  %v3235_v45 = vld [vmem:[#allocation5 + $0x124] ss:$28 sps:$4 sm:$0xff]  }
 0x1a8   :  { %2181 = vmatprep.subr.bf16.mxu1 %v3211_v47  ;;  %2224 = vmatprep.subr.bf16.mxu0 %v3214_v48  ;;  %v3238_v46 = vld [vmem:[#allocation5 + $0x4a4] ss:$28 sps:$4 sm:$0xff]  }
 0x1a9   :  { %v3233_v47 = vld [vmem:[#allocation5 + $0x120] ss:$28 sps:$4 sm:$0xff]  }
 0x1aa   :  { %v3236_v48 = vld [vmem:[#allocation5 + $0x4a0] ss:$28 sps:$4 sm:$0xff]  }
 0x1ab   :  { %2182 = vmatpush2.bf16.msra.mxu1 %v3209_v49  ;;  %2225 = vmatpush2.bf16.msra.mxu0 %v3212_v50  ;;  %v3241_v49 = vld [vmem:[#allocation5 + $0xec] ss:$28 sps:$4 sm:$0xff]  }
 0x1ac   :  { %2183 = vmatprep.subr.bf16.mxu1 %v3217_v51  ;;  %2226 = vmatprep.subr.bf16.mxu0 %v3220_v52  ;;  %v3244_v50 = vld [vmem:[#allocation5 + $0x46c] ss:$28 sps:$4 sm:$0xff]  }
 0x1ad   :  { %v3239_v51 = vld [vmem:[#allocation5 + $0xe8] ss:$28 sps:$4 sm:$0xff]  }
 0x1ae   :  { %v3242_v52 = vld [vmem:[#allocation5 + $0x468] ss:$28 sps:$4 sm:$0xff]  }
 0x1af   :  { %2184 = vmatpush2.bf16.msra.mxu1 %v3215_v53  ;;  %2227 = vmatpush2.bf16.msra.mxu0 %v3218_v54  ;;  %v3247_v53 = vld [vmem:[#allocation5 + $0xb4] ss:$28 sps:$4 sm:$0xff]  }
 0x1b0   :  { %2239 = vmatprep.subr.bf16.mxu1 %v3223_v55  ;;  %2282 = vmatprep.subr.bf16.mxu0 %v3226_v56  ;;  %v3250_v54 = vld [vmem:[#allocation5 + $0x434] ss:$28 sps:$4 sm:$0xff]  }
 0x1b1   :  { %v3245_v55 = vld [vmem:[#allocation5 + $0xb0] ss:$28 sps:$4 sm:$0xff]  }
 0x1b2   :  { %v3248_v56 = vld [vmem:[#allocation5 + $0x430] ss:$28 sps:$4 sm:$0xff]  }
 0x232   :  { %v619_v6 = vpop.f32.mrf.mxu1  ;;  %v662_v7 = vpop.f32.mrf.mxu0 }
 0x234   :  { %v621_v10 = vpop.f32.mrf.mxu1  ;;  %v664_v11 = vpop.f32.mrf.mxu0 }
 0x236   :  { %v623_v14 = vpop.f32.mrf.mxu1  ;;  %v666_v15 = vpop.f32.mrf.mxu0 }
 0x237   :  { %v671_v16 = vpack.c.bf16 %v623_v14, %v619_v6  ;;  %v673_v20 = vpack.c.bf16 %v666_v15, %v662_v7  ;;  %v3266_v6 = vld [vmem:[#allocation5 + $0x388] ss:$28 sps:$4 sm:$0xff]   ;;  %v3271_v7 = vld [vmem:[#allocation5 + $0x354] ss:$28 sps:$4 sm:$0xff]  }
 0x238   :  { %v625_v23 = vpop.f32.mrf.mxu1  ;;  %v668_v24 = vpop.f32.mrf.mxu0  ;;  %v3278_v14 = vld [vmem:[#allocation5 + $0x698] ss:$28 sps:$4 sm:$0xff]   ;;  %v3283_v15 = vld [vmem:[#allocation5 + $0x2e4] ss:$28 sps:$4 sm:$0xff]  }
 0x239   :  { %v729_v25 = vadd.bf16 %v707_v12, %v671_v16  ;;  %v731_v26 = vadd.bf16 %v721_v13, %v673_v20  ;;  %v672_v27 = vpack.c.bf16 %v625_v23, %v621_v10  ;;  %v674_v28 = vpack.c.bf16 %v668_v24, %v664_v11  ;;  %v3272_v10 = vld [vmem:[#allocation5 + $0x6d0] ss:$28 sps:$4 sm:$0xff]   ;;  %v3277_v11 = vld [vmem:[#allocation5 + $0x31c] ss:$28 sps:$4 sm:$0xff]   ;;  %v3286_v16 = vld [vmem:[#allocation5 + $0x664] ss:$28 sps:$4 sm:$0xff]  }
 0x23a   :  { %v3280_v12 = vld [vmem:[#allocation5 + $0x69c] ss:$28 sps:$4 sm:$0xff]   ;;  %v3292_v23 = vld [vmem:[#allocation5 + $0x62c] ss:$28 sps:$4 sm:$0xff]  }
 0x23b   :  { %v730_v29 = vadd.bf16 %v714_v21, %v672_v27  ;;  %v732_v30 = vadd.bf16 %v728_v22, %v674_v28  ;;  %v737_v31 = vmul.bf16 1009007652, %v729_v25  ;;  %v739_v32 = vmul.bf16 1009007652, %v731_v26  ;;  %v3275_v13 = vld [vmem:[#allocation5 + $0x318] ss:$28 sps:$4 sm:$0xff]  }
 0x23c   :  { %vm733_vm7 = vcmp.gt.bf16.partialorder %v729_v25, 0  ;;  %vm735_vm8 = vcmp.gt.bf16.partialorder %v731_v26, 0  ;;  %v3281_v20 = vld [vmem:[#allocation5 + $0x2e0] ss:$28 sps:$4 sm:$0xff]   ;;  %v3289_v22 = vld [vmem:[#allocation5 + $0x2ac] ss:$28 sps:$4 sm:$0xff]  }
 0x23d   :  { %v738_v33 = vmul.bf16 1009007652, %v730_v29  ;;  %v740_v34 = vmul.bf16 1009007652, %v732_v30  ;;  %vm734_vm9 = vcmp.gt.bf16.partialorder %v730_v29, 0  ;;  %vm736_vm10 = vcmp.gt.bf16.partialorder %v732_v30, 0 }
 0x23e   :  { %v3652_v39 = vsel %vm733_vm7, %v729_v25, %v737_v31  ;;  %v3654_v40 = vsel %vm735_vm8, %v731_v26, %v739_v32  ;;  %v3284_v21 = vld [vmem:[#allocation5 + $0x660] ss:$28 sps:$4 sm:$0xff]   ;;  %v3287_v24 = vld [vmem:[#allocation5 + $0x2a8] ss:$28 sps:$4 sm:$0xff]   ;;  %v3295_v26 = vld [vmem:[#allocation5 + $0x274] ss:$28 sps:$4 sm:$0xff]  }
 0x23f   :  { %v3646_v37 = vsel %vm734_vm9, %v730_v29, %v738_v33  ;;  %v3648_v38 = vsel %vm736_vm10, %v732_v30, %v740_v34  ;;  %v3290_v25 = vld [vmem:[#allocation5 + $0x628] ss:$28 sps:$4 sm:$0xff]   ;;  %v3298_v27 = vld [vmem:[#allocation5 + $0x5f4] ss:$28 sps:$4 sm:$0xff]   ;;  %v3301_v30 = vld [vmem:[#allocation5 + $0x23c] ss:$28 sps:$4 sm:$0xff]  }
 0x240   :  { %2185 = vmatprep.mubr.bf16.mxu1 %v3646_v37  ;;  %2228 = vmatprep.mubr.bf16.mxu0 %v3648_v38  ;;  %v3293_v28 = vld [vmem:[#allocation5 + $0x270] ss:$28 sps:$4 sm:$0xff]   ;;  %v3304_v31 = vld [vmem:[#allocation5 + $0x5bc] ss:$28 sps:$4 sm:$0xff]   ;;  %v3307_v34 = vld [vmem:[#allocation5 + $0x204] ss:$28 sps:$4 sm:$0xff]  }
 0x241   :  { %2186 = vmatmul.mubr.bf16.vlgmr.msra.gmra.mxu1 %v3652_v39  ;;  %2229 = vmatmul.mubr.bf16.vlgmr.msra.gmra.mxu0 %v3654_v40  ;;  %v3296_v29 = vld [vmem:[#allocation5 + $0x5f0] ss:$28 sps:$4 sm:$0xff]   ;;  %v3299_v32 = vld [vmem:[#allocation5 + $0x238] ss:$28 sps:$4 sm:$0xff]  }
 0x242   :  { %2240 = vmatpush1.bf16.msra.mxu1 %v3221_v35  ;;  %2283 = vmatpush1.bf16.msra.mxu0 %v3224_v36  ;;  %v3302_v33 = vld [vmem:[#allocation5 + $0x5b8] ss:$28 sps:$4 sm:$0xff]   ;;  %v3310_v35 = vld [vmem:[#allocation5 + $0x584] ss:$28 sps:$4 sm:$0xff]  }
 0x243   :  { %2271 = vmatprep.mubr.bf16.mxu1 %v3646_v37  ;;  %2314 = vmatprep.mubr.bf16.mxu0 %v3648_v38  ;;  %v3305_v36 = vld [vmem:[#allocation5 + $0x200] ss:$28 sps:$4 sm:$0xff]  }
 0x244   :  { %2241 = vmatprep.subr.bf16.mxu1 %v3229_v41  ;;  %2284 = vmatprep.subr.bf16.mxu0 %v3232_v42  ;;  %v3308_v41 = vld [vmem:[#allocation5 + $0x580] ss:$28 sps:$4 sm:$0xff]   ;;  %v3313_v42 = vld [vmem:[#allocation5 + $0x1cc] ss:$28 sps:$4 sm:$0xff]  }
 0x246   :  { %2242 = vmatpush1.bf16.msra.mxu1 %v3227_v43  ;;  %2285 = vmatpush1.bf16.msra.mxu0 %v3230_v44  ;;  %v3316_v43 = vld [vmem:[#allocation5 + $0x54c] ss:$28 sps:$4 sm:$0xff]  }
 0x247   :  { %2243 = vmatprep.subr.bf16.mxu1 %v3235_v45  ;;  %2286 = vmatprep.subr.bf16.mxu0 %v3238_v46  ;;  %v3311_v44 = vld [vmem:[#allocation5 + $0x1c8] ss:$28 sps:$4 sm:$0xff]   ;;  %v3319_v46 = vld [vmem:[#allocation5 + $0x19c] ss:$28 sps:$4 sm:$0xff]  }
 0x248   :  { %v3314_v45 = vld [vmem:[#allocation5 + $0x548] ss:$28 sps:$4 sm:$0xff]  }
 0x24a   :  { %2244 = vmatpush1.bf16.msra.mxu1 %v3233_v47  ;;  %2287 = vmatpush1.bf16.msra.mxu0 %v3236_v48  ;;  %v3322_v47 = vld [vmem:[#allocation5 + $0x51c] ss:$28 sps:$4 sm:$0xff]  }
 0x24b   :  { %2245 = vmatprep.subr.bf16.mxu1 %v3241_v49  ;;  %2288 = vmatprep.subr.bf16.mxu0 %v3244_v50  ;;  %v3317_v48 = vld [vmem:[#allocation5 + $0x198] ss:$28 sps:$4 sm:$0xff]   ;;  %v3325_v50 = vld [vmem:[#allocation5 + $0x164] ss:$28 sps:$4 sm:$0xff]  }
 0x24c   :  { %v3320_v49 = vld [vmem:[#allocation5 + $0x518] ss:$28 sps:$4 sm:$0xff]  }
 0x24e   :  { %2246 = vmatpush1.bf16.msra.mxu1 %v3239_v51  ;;  %2289 = vmatpush1.bf16.msra.mxu0 %v3242_v52  ;;  %v3328_v51 = vld [vmem:[#allocation5 + $0x4e4] ss:$28 sps:$4 sm:$0xff]  }
 0x24f   :  { %2247 = vmatprep.subr.bf16.mxu1 %v3247_v53  ;;  %2290 = vmatprep.subr.bf16.mxu0 %v3250_v54  ;;  %v3323_v52 = vld [vmem:[#allocation5 + $0x160] ss:$28 sps:$4 sm:$0xff]   ;;  %v3331_v54 = vld [vmem:[#allocation5 + $0x12c] ss:$28 sps:$4 sm:$0xff]  }
 0x250   :  { %v3326_v53 = vld [vmem:[#allocation5 + $0x4e0] ss:$28 sps:$4 sm:$0xff]  }
 0x252   :  { %2248 = vmatpush1.bf16.msra.mxu1 %v3245_v55  ;;  %2291 = vmatpush1.bf16.msra.mxu0 %v3248_v56  ;;  %v3334_v55 = vld [vmem:[#allocation5 + $0x4ac] ss:$28 sps:$4 sm:$0xff]  }
 0x253   :  { %2249 = vmatprep.subr.bf16.mxu1 %v3253_v58  ;;  %2292 = vmatprep.subr.bf16.mxu0 %v3256_v60  ;;  %v3329_v56 = vld [vmem:[#allocation5 + $0x128] ss:$28 sps:$4 sm:$0xff]   ;;  %v3337_v60 = vld [vmem:[#allocation5 + $0xf4] ss:$28 sps:$4 sm:$0xff]  }
 0x254   :  { %v3332_v58 = vld [vmem:[#allocation5 + $0x4a8] ss:$28 sps:$4 sm:$0xff]  }
 0x256   :  { %2250 = vmatpush1.bf16.msra.mxu1 %v3251_v61  ;;  %2293 = vmatpush1.bf16.msra.mxu0 %v3254_v62  ;;  %v3340_v61 = vld [vmem:[#allocation5 + $0x474] ss:$28 sps:$4 sm:$0xff]  }
 0x257   :  { %2251 = vmatprep.subr.bf16.mxu1 %v3259_v63  ;;  %2294 = vmatprep.subr.bf16.mxu0 %v3262_v0  ;;  %v3335_v62 = vld [vmem:[#allocation5 + $0xf0] ss:$28 sps:$4 sm:$0xff]   ;;  %v3343_v0 = vld [vmem:[#allocation5 + $0xbc] ss:$28 sps:$4 sm:$0xff]  }
 0x258   :  { %v3338_v63 = vld [vmem:[#allocation5 + $0x470] ss:$28 sps:$4 sm:$0xff]  }
 0x25a   :  { %2252 = vmatpush1.bf16.msra.mxu1 %v3257_v1  ;;  %2295 = vmatpush1.bf16.msra.mxu0 %v3260_v2  ;;  %v3346_v1 = vld [vmem:[#allocation5 + $0x43c] ss:$28 sps:$4 sm:$0xff]  }
 0x25b   :  { %2253 = vmatprep.subr.bf16.mxu1 %v3265_v3  ;;  %2296 = vmatprep.subr.bf16.mxu0 %v3268_v4  ;;  %v3341_v2 = vld [vmem:[#allocation5 + $0xb8] ss:$28 sps:$4 sm:$0xff]   ;;  %v3349_v4 = vld [vmem:[#allocation5 + $0x84] ss:$28 sps:$4 sm:$0xff]  }
 0x25c   :  { %v3344_v3 = vld [vmem:[#allocation5 + $0x438] ss:$28 sps:$4 sm:$0xff]  }
 0x25e   :  { %2254 = vmatpush1.bf16.msra.mxu1 %v3263_v5  ;;  %2297 = vmatpush1.bf16.msra.mxu0 %v3266_v6  ;;  %v3352_v5 = vld [vmem:[#allocation5 + $0x404] ss:$28 sps:$4 sm:$0xff]  }
 0x25f   :  { %2255 = vmatprep.subr.bf16.mxu1 %v3271_v7  ;;  %2298 = vmatprep.subr.bf16.mxu0 %v3274_v8  ;;  %v3347_v6 = vld [vmem:[#allocation5 + $0x80] ss:$28 sps:$4 sm:$0xff]   ;;  %v3355_v8 = vld [vmem:[#allocation5 + $0x4c] ss:$28 sps:$4 sm:$0xff]  }
 0x260   :  { %v3350_v7 = vld [vmem:[#allocation5 + $0x400] ss:$28 sps:$4 sm:$0xff]  }
 0x262   :  { %2256 = vmatpush2.bf16.msra.mxu1 %v3269_v9  ;;  %2299 = vmatpush2.bf16.msra.mxu0 %v3272_v10  ;;  %v3358_v9 = vld [vmem:[#allocation5 + $0x3cc] ss:$28 sps:$4 sm:$0xff]  }
 0x263   :  { %2257 = vmatprep.subr.bf16.mxu1 %v3277_v11  ;;  %2300 = vmatprep.subr.bf16.mxu0 %v3280_v12  ;;  %v3353_v10 = vld [vmem:[#allocation5 + $0x48] ss:$28 sps:$4 sm:$0xff]   ;;  %v3361_v12 = vld [vmem:[#allocation5 + $0x14] ss:$28 sps:$4 sm:$0xff]  }
 0x264   :  { %v3356_v11 = vld [vmem:[#allocation5 + $0x3c8] ss:$28 sps:$4 sm:$0xff]  }
 0x266   :  { %2258 = vmatpush2.bf16.msra.mxu1 %v3275_v13  ;;  %2301 = vmatpush2.bf16.msra.mxu0 %v3278_v14  ;;  %v3364_v13 = vld [vmem:[#allocation5 + $0x394] ss:$28 sps:$4 sm:$0xff]  }
 0x267   :  { %2259 = vmatprep.subr.bf16.mxu1 %v3283_v15  ;;  %2302 = vmatprep.subr.bf16.mxu0 %v3286_v16  ;;  %v3359_v14 = vld [vmem:[#allocation5 + $0x10] ss:$28 sps:$4 sm:$0xff]   ;;  %v3367_v16 = vld [vmem:[#allocation5 + $0x35c] ss:$28 sps:$4 sm:$0xff]  }
 0x268   :  { %v3362_v15 = vld [vmem:[#allocation5 + $0x390] ss:$28 sps:$4 sm:$0xff]  }
 0x26a   :  { %2260 = vmatpush2.bf16.msra.mxu1 %v3281_v20  ;;  %2303 = vmatpush2.bf16.msra.mxu0 %v3284_v21  ;;  %v3370_v20 = vld [vmem:[#allocation5 + $0x6dc] ss:$28 sps:$4 sm:$0xff]  }
 0x26b   :  { %2261 = vmatprep.subr.bf16.mxu1 %v3289_v22  ;;  %2304 = vmatprep.subr.bf16.mxu0 %v3292_v23  ;;  %v3365_v21 = vld [vmem:[#allocation5 + $0x358] ss:$28 sps:$4 sm:$0xff]   ;;  %v3373_v23 = vld [vmem:[#allocation5 + $0x324] ss:$28 sps:$4 sm:$0xff]  }
 0x26c   :  { %v3368_v22 = vld [vmem:[#allocation5 + $0x6d8] ss:$28 sps:$4 sm:$0xff]  }
 0x26e   :  { %2262 = vmatpush2.bf16.msra.mxu1 %v3287_v24  ;;  %2305 = vmatpush2.bf16.msra.mxu0 %v3290_v25  ;;  %v3376_v24 = vld [vmem:[#allocation5 + $0x6a4] ss:$28 sps:$4 sm:$0xff]  }
 0x26f   :  { %2263 = vmatprep.subr.bf16.mxu1 %v3295_v26  ;;  %2306 = vmatprep.subr.bf16.mxu0 %v3298_v27  ;;  %v3371_v25 = vld [vmem:[#allocation5 + $0x320] ss:$28 sps:$4 sm:$0xff]   ;;  %v3379_v27 = vld [vmem:[#allocation5 + $0x2ec] ss:$28 sps:$4 sm:$0xff]  }
 0x270   :  { %v3374_v26 = vld [vmem:[#allocation5 + $0x6a0] ss:$28 sps:$4 sm:$0xff]  }
 0x272   :  { %2264 = vmatpush2.bf16.msra.mxu1 %v3293_v28  ;;  %2307 = vmatpush2.bf16.msra.mxu0 %v3296_v29  ;;  %v3382_v28 = vld [vmem:[#allocation5 + $0x66c] ss:$28 sps:$4 sm:$0xff]  }
 0x273   :  { %2265 = vmatprep.subr.bf16.mxu1 %v3301_v30  ;;  %2308 = vmatprep.subr.bf16.mxu0 %v3304_v31  ;;  %v3377_v29 = vld [vmem:[#allocation5 + $0x2e8] ss:$28 sps:$4 sm:$0xff]   ;;  %v3385_v31 = vld [vmem:[#allocation5 + $0x2b4] ss:$28 sps:$4 sm:$0xff]  }
 0x274   :  { %v3380_v30 = vld [vmem:[#allocation5 + $0x668] ss:$28 sps:$4 sm:$0xff]  }
 0x276   :  { %2266 = vmatpush2.bf16.msra.mxu1 %v3299_v32  ;;  %2309 = vmatpush2.bf16.msra.mxu0 %v3302_v33  ;;  %v3388_v32 = vld [vmem:[#allocation5 + $0x634] ss:$28 sps:$4 sm:$0xff]  }
 0x277   :  { %2267 = vmatprep.subr.bf16.mxu1 %v3307_v34  ;;  %2310 = vmatprep.subr.bf16.mxu0 %v3310_v35  ;;  %v3383_v33 = vld [vmem:[#allocation5 + $0x2b0] ss:$28 sps:$4 sm:$0xff]   ;;  %v3391_v35 = vld [vmem:[#allocation5 + $0x27c] ss:$28 sps:$4 sm:$0xff]  }
 0x278   :  { %v3386_v34 = vld [vmem:[#allocation5 + $0x630] ss:$28 sps:$4 sm:$0xff]  }
 0x27a   :  { %2268 = vmatpush2.bf16.msra.mxu1 %v3305_v36  ;;  %2311 = vmatpush2.bf16.msra.mxu0 %v3308_v41  ;;  %v3394_v36 = vld [vmem:[#allocation5 + $0x5fc] ss:$28 sps:$4 sm:$0xff]  }
 0x27b   :  { %2269 = vmatprep.subr.bf16.mxu1 %v3313_v42  ;;  %2312 = vmatprep.subr.bf16.mxu0 %v3316_v43  ;;  %v3389_v41 = vld [vmem:[#allocation5 + $0x278] ss:$28 sps:$4 sm:$0xff]   ;;  %v3397_v43 = vld [vmem:[#allocation5 + $0x244] ss:$28 sps:$4 sm:$0xff]  }
 0x27c   :  { %v3392_v42 = vld [vmem:[#allocation5 + $0x5f8] ss:$28 sps:$4 sm:$0xff]  }
 0x27e   :  { %2270 = vmatpush2.bf16.msra.mxu1 %v3311_v44  ;;  %2313 = vmatpush2.bf16.msra.mxu0 %v3314_v45  ;;  %v3400_v44 = vld [vmem:[#allocation5 + $0x5c4] ss:$28 sps:$4 sm:$0xff]  }
 0x27f   :  { %2325 = vmatprep.subr.bf16.mxu1 %v3319_v46  ;;  %2368 = vmatprep.subr.bf16.mxu0 %v3322_v47  ;;  %v3395_v45 = vld [vmem:[#allocation5 + $0x240] ss:$28 sps:$4 sm:$0xff]   ;;  %v3403_v47 = vld [vmem:[#allocation5 + $0x20c] ss:$28 sps:$4 sm:$0xff]  }
 0x280   :  { %v3398_v46 = vld [vmem:[#allocation5 + $0x5c0] ss:$28 sps:$4 sm:$0xff]  }
 0x281   :  { %2272 = vmatmul.mubr.bf16.vlgmr.msra.gmra.mxu1 %v3652_v39  ;;  %2315 = vmatmul.mubr.bf16.vlgmr.msra.gmra.mxu0 %v3654_v40 }
 0x282   :  { %2326 = vmatpush1.bf16.msra.mxu1 %v3317_v48  ;;  %2357 = vmatprep.mubr.bf16.mxu1 %v3646_v37  ;;  %v3406_v48 = vld [vmem:[#allocation5 + $0x58c] ss:$28 sps:$4 sm:$0xff]  }
 0x283   :  { %2369 = vmatpush1.bf16.msra.mxu0 %v3320_v49  ;;  %2400 = vmatprep.mubr.bf16.mxu0 %v3648_v38  ;;  %v3401_v49 = vld [vmem:[#allocation5 + $0x208] ss:$28 sps:$4 sm:$0xff]  }
 0x284   :  { %2327 = vmatprep.subr.bf16.mxu1 %v3325_v50  ;;  %2370 = vmatprep.subr.bf16.mxu0 %v3328_v51  ;;  %v3404_v50 = vld [vmem:[#allocation5 + $0x588] ss:$28 sps:$4 sm:$0xff]   ;;  %v3409_v51 = vld [vmem:[#allocation5 + $0x1d4] ss:$28 sps:$4 sm:$0xff]  }
 0x286   :  { %2328 = vmatpush1.bf16.msra.mxu1 %v3323_v52  ;;  %v3412_v52 = vld [vmem:[#allocation5 + $0x554] ss:$28 sps:$4 sm:$0xff]  }
 0x287   :  { %2371 = vmatpush1.bf16.msra.mxu0 %v3326_v53  ;;  %2329 = vmatprep.subr.bf16.mxu1 %v3331_v54  ;;  %v3407_v53 = vld [vmem:[#allocation5 + $0x1d0] ss:$28 sps:$4 sm:$0xff]  }
 0x288   :  { %2372 = vmatprep.subr.bf16.mxu0 %v3334_v55  ;;  %v3410_v54 = vld [vmem:[#allocation5 + $0x550] ss:$28 sps:$4 sm:$0xff]   ;;  %v3413_v55 = vld [vmem:[#allocation5 + $0x360] ss:$28 sps:$4 sm:$0xff]  }
 0x28a   :  { %2330 = vmatpush1.bf16.msra.mxu1 %v3329_v56  ;;  %v3414_v56 = vld [vmem:[#allocation5 + $0x6e0] ss:$28 sps:$4 sm:$0xff]  }
 0x28b   :  { %2373 = vmatpush1.bf16.msra.mxu0 %v3332_v58  ;;  %2331 = vmatprep.subr.bf16.mxu1 %v3337_v60  ;;  %v3415_v58 = vld [vmem:[#allocation5 + $0x1a0] ss:$28 sps:$4 sm:$0xff]  }
 0x28c   :  { %2374 = vmatprep.subr.bf16.mxu0 %v3340_v61  ;;  %v3416_v60 = vld [vmem:[#allocation5 + $0x520] ss:$28 sps:$4 sm:$0xff]   ;;  %v3417_v61 = vld [vmem:[#allocation5 + $0x328] ss:$28 sps:$4 sm:$0xff]  }
 0x28e   :  { %2332 = vmatpush1.bf16.msra.mxu1 %v3335_v62  ;;  %v3418_v62 = vld [vmem:[#allocation5 + $0x6a8] ss:$28 sps:$4 sm:$0xff]  }
 0x28f   :  { %2375 = vmatpush1.bf16.msra.mxu0 %v3338_v63  ;;  %2333 = vmatprep.subr.bf16.mxu1 %v3343_v0  ;;  %v3419_v63 = vld [vmem:[#allocation5 + $0x168] ss:$28 sps:$4 sm:$0xff]  }
 0x290   :  { %2376 = vmatprep.subr.bf16.mxu0 %v3346_v1  ;;  %v3420_v0 = vld [vmem:[#allocation5 + $0x4e8] ss:$28 sps:$4 sm:$0xff]   ;;  %v3421_v1 = vld [vmem:[#allocation5 + $0x2f0] ss:$28 sps:$4 sm:$0xff]  }
 0x292   :  { %2334 = vmatpush1.bf16.msra.mxu1 %v3341_v2  ;;  %v3422_v2 = vld [vmem:[#allocation5 + $0x670] ss:$28 sps:$4 sm:$0xff]  }
 0x293   :  { %2377 = vmatpush1.bf16.msra.mxu0 %v3344_v3  ;;  %2335 = vmatprep.subr.bf16.mxu1 %v3349_v4  ;;  %v3423_v3 = vld [vmem:[#allocation5 + $0x130] ss:$28 sps:$4 sm:$0xff]  }
 0x294   :  { %2378 = vmatprep.subr.bf16.mxu0 %v3352_v5  ;;  %v3424_v4 = vld [vmem:[#allocation5 + $0x4b0] ss:$28 sps:$4 sm:$0xff]   ;;  %v3425_v5 = vld [vmem:[#allocation5 + $0x2b8] ss:$28 sps:$4 sm:$0xff]  }
 0x296   :  { %2336 = vmatpush1.bf16.msra.mxu1 %v3347_v6  ;;  %v3426_v6 = vld [vmem:[#allocation5 + $0x638] ss:$28 sps:$4 sm:$0xff]  }
 0x297   :  { %2379 = vmatpush1.bf16.msra.mxu0 %v3350_v7  ;;  %2337 = vmatprep.subr.bf16.mxu1 %v3355_v8  ;;  %v3427_v7 = vld [vmem:[#allocation5 + $0xf8] ss:$28 sps:$4 sm:$0xff]   ;;  %v3429_v8 = vld [vmem:[#allocation5 + $0x280] ss:$28 sps:$4 sm:$0xff]  }
 0x298   :  { %2380 = vmatprep.subr.bf16.mxu0 %v3358_v9  ;;  %v3430_v9 = vld [vmem:[#allocation5 + $0x600] ss:$28 sps:$4 sm:$0xff]  }
 0x29a   :  { %2338 = vmatpush1.bf16.msra.mxu1 %v3353_v10  ;;  %v3432_v10 = vld [vmem:[#allocation5 + $0x440] ss:$28 sps:$4 sm:$0xff]  }
 0x29b   :  { %2381 = vmatpush1.bf16.msra.mxu0 %v3356_v11  ;;  %2339 = vmatprep.subr.bf16.mxu1 %v3361_v12  ;;  %v3433_v11 = vld [vmem:[#allocation5 + $0x248] ss:$28 sps:$4 sm:$0xff]  }
 0x29c   :  { %2382 = vmatprep.subr.bf16.mxu0 %v3364_v13  ;;  %v3434_v12 = vld [vmem:[#allocation5 + $0x5c8] ss:$28 sps:$4 sm:$0xff]  }
 0x29d   :  { %v3435_v13 = vld [vmem:[#allocation5 + $0x88] ss:$28 sps:$4 sm:$0xff]  }
 0x29e   :  { %2340 = vmatpush1.bf16.msra.mxu1 %v3359_v14  ;;  %v3436_v14 = vld [vmem:[#allocation5 + $0x408] ss:$28 sps:$4 sm:$0xff]  }
 0x29f   :  { %2383 = vmatpush1.bf16.msra.mxu0 %v3362_v15  ;;  %2341 = vmatprep.subr.bf16.mxu1 %v3367_v16  ;;  %v3437_v15 = vld [vmem:[#allocation5 + $0x210] ss:$28 sps:$4 sm:$0xff]  }
 0x2a0   :  { %2384 = vmatprep.subr.bf16.mxu0 %v3370_v20  ;;  %v3438_v16 = vld [vmem:[#allocation5 + $0x590] ss:$28 sps:$4 sm:$0xff]  }
 0x2a1   :  { %v3439_v20 = vld [vmem:[#allocation5 + $0x50] ss:$28 sps:$4 sm:$0xff]  }
 0x2a2   :  { %2342 = vmatpush2.bf16.msra.mxu1 %v3365_v21  ;;  %v3440_v21 = vld [vmem:[#allocation5 + $0x3d0] ss:$28 sps:$4 sm:$0xff]  }
 0x2a3   :  { %2385 = vmatpush2.bf16.msra.mxu0 %v3368_v22  ;;  %2343 = vmatprep.subr.bf16.mxu1 %v3373_v23  ;;  %v3441_v22 = vld [vmem:[#allocation5 + $0x1d8] ss:$28 sps:$4 sm:$0xff]  }
 0x2a4   :  { %2386 = vmatprep.subr.bf16.mxu0 %v3376_v24  ;;  %v3442_v23 = vld [vmem:[#allocation5 + $0x558] ss:$28 sps:$4 sm:$0xff]  }
 0x2a5   :  { %v3443_v24 = vld [vmem:[#allocation5 + $0x18] ss:$28 sps:$4 sm:$0xff]  }
 0x2a6   :  { %2344 = vmatpush2.bf16.msra.mxu1 %v3371_v25  ;;  %v3444_v25 = vld [vmem:[#allocation5 + $0x398] ss:$28 sps:$4 sm:$0xff]  }
 0x2a7   :  { %2387 = vmatpush2.bf16.msra.mxu0 %v3374_v26  ;;  %2345 = vmatprep.subr.bf16.mxu1 %v3379_v27  ;;  %v3673_v26 = vld [vmem:[%s3712_s8] sm:$0xff]  ;;  %s3533_s8 = smov [#allocation7]  }
 0x2a8   :  { %2388 = vmatprep.subr.bf16.mxu0 %v3382_v28  ;;  %v2505_v27 = vrot.slane %v3673_v26, %v3619_v19  ;;  %v2509_v28 = vrot.slane %v3673_v26, %v3616_v18  ;;  %s2657_s14 = sshll.u32 %s3533_s8, 4  ;;  %s2658_s14 = int_to_ptr.vmem [resolvable:$true] %s2657_s14 }
 0x2a9   :  { %s3499_s15 = scalar_lea.vmem %s2658_s14, 896  ;;  %p3504_p11 = scmp.lt.s32.totalorder %s2658_s14, %s2658_s14 }
 0x2aa   :  { %2346 = vmatpush2.bf16.msra.mxu1 %v3377_v29  ;;  %v2537_v29 = vpack.c.bf16 %v2505_v27, %v2505_v27  ;;  %p3500_p10 = scmp.ne.s32.totalorder %s2658_s14, %s3499_s15  ;;  %p3505_p12 = scmp.lt.s32.totalorder %s3499_s15, %s3499_s15 }
 0x2ab   :  { %2389 = vmatpush2.bf16.msra.mxu0 %v3380_v30  ;;  %2347 = vmatprep.subr.bf16.mxu1 %v3385_v31  ;;  %v2538_v30 = vpack.c.bf16 %v2509_v28, %v2509_v28 }
 0x2ac   :  { %2390 = vmatprep.subr.bf16.mxu0 %v3388_v32  ;;  %p3506_p13 = por %p3505_p12, %p3504_p11 }
 0x2ae   :  { %2348 = vmatpush2.bf16.msra.mxu1 %v3383_v33  ;;  %v2545_v33 = vpack.i.b16 %v2537_v29, %v2537_v29  ;;  %p3507_p0 = pnand %p3506_p13, %p3500_p10 }
 0x2af   :  { %2391 = vmatpush2.bf16.msra.mxu0 %v3386_v34  ;;  %2349 = vmatprep.subr.bf16.mxu1 %v3391_v35  ;;  %v2552_v35 = vpack.i.b16 %v2538_v30, %v2538_v30 }
 0x2b0   :  { %2392 = vmatprep.subr.bf16.mxu0 %v3394_v36 }
 0x2b1   :  { %v2557_v18 = vrot.slane %v2552_v35, %v3619_v19 }
 0x2b2   :  { %2350 = vmatpush2.bf16.msra.mxu1 %v3389_v41 }
 0x2b3   :  { %2393 = vmatpush2.bf16.msra.mxu0 %v3392_v42  ;;  %2351 = vmatprep.subr.bf16.mxu1 %v3397_v43  ;;  %v2550_v43 = vrot.slane %v2545_v33, %v3619_v19 }
 0x2b4   :  { %2394 = vmatprep.subr.bf16.mxu0 %v3400_v44 }
 0x2b6   :  { %2352 = vmatpush2.bf16.msra.mxu1 %v3395_v45 }
 0x2b7   :  { %2395 = vmatpush2.bf16.msra.mxu0 %v3398_v46  ;;  %2353 = vmatprep.subr.bf16.mxu1 %v3403_v47 }
 0x2b8   :  { %2396 = vmatprep.subr.bf16.mxu0 %v3406_v48 }
 0x2ba   :  { %2354 = vmatpush2.bf16.msra.mxu1 %v3401_v49 }
 0x2bb   :  { %2397 = vmatpush2.bf16.msra.mxu0 %v3404_v50  ;;  %2355 = vmatprep.subr.bf16.mxu1 %v3409_v51 }
 0x2bc   :  { %2398 = vmatprep.subr.bf16.mxu0 %v3412_v52 }
 0x2be   :  { %2356 = vmatpush2.bf16.msra.mxu1 %v3407_v53 }
 0x2bf   :  { %2399 = vmatpush2.bf16.msra.mxu0 %v3410_v54  ;;  %2971 = vmatprep.subr.bf16.mxu1 %v3413_v55 }
 0x2c0   :  { %2993 = vmatprep.subr.bf16.mxu0 %v3414_v56  ;;  %v2513_v56 = vrot.slane %v3673_v26, %v687_v57 }
 0x2c1   :  { %2358 = vmatmul.mubr.bf16.vlgmr.msra.gmra.mxu1 %v3652_v39 }
 0x2c2   :  { %2401 = vmatmul.mubr.bf16.vlgmr.msra.gmra.mxu0 %v3654_v40  ;;  %2972 = vmatpush3.bf16.msra.mxu1 %v3415_v58  ;;  %v2517_v58 = vrot.slane %v3673_v26, %v691_v59 }
 0x2c3   :  { %2443 = vmatprep.mubr.bf16.mxu1 %v3646_v37  ;;  %2994 = vmatpush3.bf16.msra.mxu0 %v3416_v60  ;;  %v3428_v37 = vld [vmem:[#allocation5 + $0x478] ss:$28 sps:$4 sm:$0xff]   ;;  %v2539_v60 = vpack.c.bf16 %v2513_v56, %v2513_v56 }
 0x2c4   :  { %2484 = vmatprep.mubr.bf16.mxu0 %v3648_v38  ;;  %2973 = vmatprep.subr.bf16.mxu1 %v3417_v61  ;;  %v3431_v38 = vld [vmem:[#allocation5 + $0xc0] ss:$28 sps:$4 sm:$0xff]   ;;  %v2540_v61 = vpack.c.bf16 %v2517_v58, %v2517_v58 }
 0x2c5   :  { %2995 = vmatprep.subr.bf16.mxu0 %v3418_v62 }
 0x2c6   :  { %2974 = vmatpush3.bf16.msra.mxu1 %v3419_v63 }
 0x2c7   :  { %2996 = vmatpush3.bf16.msra.mxu0 %v3420_v0  ;;  %2975 = vmatprep.subr.bf16.mxu1 %v3421_v1  ;;  %v2559_v0 = vpack.i.b16 %v2539_v60, %v2539_v60 }
 0x2c8   :  { %2997 = vmatprep.subr.bf16.mxu0 %v3422_v2 }
 0x2ca   :  { %2976 = vmatpush3.bf16.msra.mxu1 %v3423_v3  ;;  %v2566_v3 = vpack.i.b16 %v2540_v61, %v2540_v61 }
 0x2cb   :  { %2998 = vmatpush3.bf16.msra.mxu0 %v3424_v4  ;;  %2977 = vmatprep.subr.bf16.mxu1 %v3425_v5 }
 0x2cc   :  { %2999 = vmatprep.subr.bf16.mxu0 %v3426_v6  ;;  %v2571_v59 = vrot.slane %v2566_v3, %v3619_v19 }
 0x2ce   :  { %2978 = vmatpush3.bf16.msra.mxu1 %v3427_v7 }
 0x2cf   :  { %3000 = vmatpush3.bf16.msra.mxu0 %v3428_v37  ;;  %2979 = vmatprep.subr.bf16.mxu1 %v3429_v8  ;;  %v2564_v37 = vrot.slane %v2559_v0, %v3619_v19 }
 0x2d0   :  { %3001 = vmatprep.subr.bf16.mxu0 %v3430_v9 }
 0x2d2   :  { %2980 = vmatpush3.bf16.msra.mxu1 %v3431_v38 }
 0x2d3   :  { %3002 = vmatpush3.bf16.msra.mxu0 %v3432_v10  ;;  %2981 = vmatprep.subr.bf16.mxu1 %v3433_v11 }
 0x2d4   :  { %3003 = vmatprep.subr.bf16.mxu0 %v3434_v12 }
 0x2d6   :  { %2982 = vmatpush3.bf16.msra.mxu1 %v3435_v13 }
 0x2d7   :  { %3004 = vmatpush3.bf16.msra.mxu0 %v3436_v14  ;;  %2983 = vmatprep.subr.bf16.mxu1 %v3437_v15 }
 0x2d8   :  { %3005 = vmatprep.subr.bf16.mxu0 %v3438_v16 }
 0x2da   :  { %2984 = vmatpush3.bf16.msra.mxu1 %v3439_v20 }
 0x2db   :  { %3006 = vmatpush3.bf16.msra.mxu0 %v3440_v21  ;;  %2985 = vmatprep.subr.bf16.mxu1 %v3441_v22  ;;  %v2520_v21 = vsub.s32 4, %v3613_v17  ;;  %v2524_v22 = vsub.s32 5, %v3613_v17 }
 0x2dc   :  { %3007 = vmatprep.subr.bf16.mxu0 %v3442_v23 }
 0x2dd   :  { %v2521_v23 = vrot.slane %v3673_v26, %v2520_v21 }
 0x2de   :  { %2986 = vmatpush3.bf16.msra.mxu1 %v3443_v24  ;;  %v2525_v24 = vrot.slane %v3673_v26, %v2524_v22 }
 0x2df   :  { %3008 = vmatpush3.bf16.msra.mxu0 %v3444_v25  ;;  %v2541_v25 = vpack.c.bf16 %v2521_v23, %v2521_v23 }
 0x2e0   :  { %v2542_v28 = vpack.c.bf16 %v2525_v24, %v2525_v24 }
 0x2e1   :  { %2444 = vmatmul.mubr.bf16.vlgmr.msra.gmra.mxu1 %v3652_v39 }
 0x2e2   :  { %2485 = vmatmul.mubr.bf16.vlgmr.msra.gmra.mxu0 %v3654_v40 }
 0x301   :  { %v2187_v31 = vpop.f32.mrf.mxu1  ;;  %v2230_v32 = vpop.f32.mrf.mxu0 }
 0x302   :  { %v2231_v41 = vadd.f32 %v2230_v32, %v2187_v31  ;;  %v2573_v31 = vpack.i.b16 %v2541_v25, %v2541_v25 }
 0x303   :  { %v2189_v34 = vpop.f32.mrf.mxu1  ;;  %v2232_v39 = vpop.f32.mrf.mxu0 }
 0x304   :  { %v2233_v46 = vadd.f32 %v2232_v39, %v2189_v34  ;;  %v2580_v34 = vpack.i.b16 %v2542_v28, %v2542_v28 }
 0x305   :  { %v2191_v40 = vpop.f32.mrf.mxu1  ;;  %v2234_v36 = vpop.f32.mrf.mxu0 }
 0x306   :  { %v2235_v42 = vadd.f32 %v2234_v36, %v2191_v40  ;;  %v2578_v36 = vrot.slane %v2573_v31, %v3619_v19 }
 0x307   :  { %v2193_v44 = vpop.f32.mrf.mxu1  ;;  %v2236_v45 = vpop.f32.mrf.mxu0 }
 0x308   :  { %v2493_v47 = vpack.c.bf16 %v2235_v42, %v2231_v41  ;;  %v2237_v48 = vadd.f32 %v2236_v45, %v2193_v44 }
 0x30a   :  { %v2593_v49 = vadd.bf16 %v2550_v43, %v2493_v47  ;;  %v2494_v50 = vpack.c.bf16 %v2237_v48, %v2233_v46  ;;  %v2585_v46 = vrot.slane %v2580_v34, %v3619_v19 }
 0x30c   :  { %v2594_v51 = vadd.bf16 %v2557_v18, %v2494_v50  ;;  %3445 = vtanh.bf16 %v2593_v49  ;;  %v2528_v49 = vsub.s32 6, %v3613_v17 }
 0x30e   :  { %3447 = vtanh.bf16 %v2594_v51 }
 0x31a   :  { %v3446_v52 = vpop.eup %3445 }
 0x31c   :  { %v3448_v53 = vpop.eup %3447 }
 0x31d   :  { %v2963_v54 = vcombine.low %v3446_v52, %v3448_v53  ;;  %v2967_v55 = vcombine.high %v3446_v52, %v3448_v53 }
 0x31f   :  { %2644 = vst [vmem:[#allocation7] sm:$0xff] %v2963_v54  ;;  %2648 = vst [vmem:[#allocation7 + $0x1c] sm:$0xff] %v2967_v55  ;;  %v2529_v54 = vrot.slane %v3673_v26, %v2528_v49 }
 0x321   :  { %v2543_v60 = vpack.c.bf16 %v2529_v54, %v2529_v54 }
 0x323   :  { %v2587_v3 = vpack.i.b16 %v2543_v60, %v2543_v60 }
 0x325   :  { %v2592_v26 = vrot.slane %v2587_v3, %v3619_v19 }
 0x341   :  { %v2273_v62 = vpop.f32.mrf.mxu1  ;;  %v2316_v63 = vpop.f32.mrf.mxu0 }
 0x342   :  { %v2317_v6 = vadd.f32 %v2316_v63, %v2273_v62 }
 0x343   :  { %v2275_v1 = vpop.f32.mrf.mxu1  ;;  %v2318_v2 = vpop.f32.mrf.mxu0 }
 0x344   :  { %v2319_v9 = vadd.f32 %v2318_v2, %v2275_v1 }
 0x345   :  { %v2277_v4 = vpop.f32.mrf.mxu1  ;;  %v2320_v5 = vpop.f32.mrf.mxu0 }
 0x346   :  { %v2321_v7 = vadd.f32 %v2320_v5, %v2277_v4 }
 0x347   :  { %v2279_v8 = vpop.f32.mrf.mxu1  ;;  %v2322_v57 = vpop.f32.mrf.mxu0 }
 0x348   :  { %v2495_v38 = vpack.c.bf16 %v2321_v7, %v2317_v6  ;;  %v2323_v10 = vadd.f32 %v2322_v57, %v2279_v8 }
 0x34a   :  { %v2595_v11 = vadd.bf16 %v2564_v37, %v2495_v38  ;;  %v2496_v12 = vpack.c.bf16 %v2323_v10, %v2319_v9 }
 0x34c   :  { %v2596_v13 = vadd.bf16 %v2571_v59, %v2496_v12  ;;  %3449 = vtanh.bf16 %v2595_v11 }
 0x34e   :  { %3451 = vtanh.bf16 %v2596_v13 }
 0x35a   :  { %v3450_v14 = vpop.eup %3449 }
 0x35c   :  { %v3452_v15 = vpop.eup %3451 }
 0x35d   :  { %v2964_v16 = vcombine.low %v3450_v14, %v3452_v15  ;;  %v2968_v20 = vcombine.high %v3450_v14, %v3452_v15 }
 0x35f   :  { %2645 = vst [vmem:[#allocation7 + $0x8] sm:$0xff] %v2964_v16  ;;  %2649 = vst [vmem:[#allocation7 + $0x24] sm:$0xff] %v2968_v20 }
 0x381   :  { %v2359_v27 = vpop.f32.mrf.mxu1 }
 0x382   :  { %v2402_v29 = vpop.f32.mrf.mxu0 }
 0x383   :  { %v2361_v30 = vpop.f32.mrf.mxu1  ;;  %v2403_v35 = vadd.f32 %v2402_v29, %v2359_v27 }
 0x384   :  { %v2404_v32 = vpop.f32.mrf.mxu0 }
 0x385   :  { %v2363_v33 = vpop.f32.mrf.mxu1  ;;  %v2405_v43 = vadd.f32 %v2404_v32, %v2361_v30 }
 0x386   :  { %v2406_v39 = vpop.f32.mrf.mxu0 }
 0x387   :  { %v2407_v40 = vadd.f32 %v2406_v39, %v2363_v33  ;;  %v2365_v41 = vpop.f32.mrf.mxu1 }
 0x388   :  { %v2408_v42 = vpop.f32.mrf.mxu0 }
 0x389   :  { %v2497_v44 = vpack.c.bf16 %v2407_v40, %v2403_v35  ;;  %v2409_v45 = vadd.f32 %v2408_v42, %v2365_v41 }
 0x38b   :  { %v2597_v47 = vadd.bf16 %v2578_v36, %v2497_v44  ;;  %v2498_v48 = vpack.c.bf16 %v2409_v45, %v2405_v43 }
 0x38d   :  { %v2598_v18 = vadd.bf16 %v2585_v46, %v2498_v48  ;;  %3453 = vtanh.bf16 %v2597_v47 }
 0x38f   :  { %3455 = vtanh.bf16 %v2598_v18 }
 0x39b   :  { %v3454_v50 = vpop.eup %3453 }
 0x39d   :  { %v3456_v51 = vpop.eup %3455 }
 0x39e   :  { %v2965_v52 = vcombine.low %v3454_v50, %v3456_v51  ;;  %v2969_v53 = vcombine.high %v3454_v50, %v3456_v51 }
 0x3a0   :  { %2646 = vst [vmem:[#allocation7 + $0x10] sm:$0xff] %v2965_v52  ;;  %2650 = vst [vmem:[#allocation7 + $0x2c] sm:$0xff] %v2969_v53 }
 0x3a1   :  { %v2987_v55 = vpop.f32.mrf.mxu1 }
 0x3a2   :  { %v3009_v56 = vpop.f32.mrf.mxu0 }
 0x3a3   :  { %v2988_v58 = vpop.f32.mrf.mxu1 }
 0x3a4   :  { %v3010_v61 = vpop.f32.mrf.mxu0  ;;  %v2989_v0 = vadd.f32 %v2988_v58, %v2987_v55 }
 0x3a5   :  { %v2990_v62 = vpop.f32.mrf.mxu1  ;;  %v3011_v1 = vadd.f32 %v3010_v61, %v3009_v56 }
 0x3a6   :  { %v3012_v63 = vpop.f32.mrf.mxu0 }
 0x3a7   :  { %v2991_v2 = vpop.f32.mrf.mxu1  ;;  %v2487_v6 = vadd.f32 %v3011_v1, %v2989_v0 }
 0x3a8   :  { %v2992_v17 = vadd.f32 %v2991_v2, %v2990_v62  ;;  %v3013_v4 = vpop.f32.mrf.mxu0 }
 0x3a9   :  { %v3014_v5 = vadd.f32 %v3013_v4, %v3012_v63 }
 0x3ab   :  { %v2490_v7 = vadd.f32 %v3014_v5, %v2992_v17 }
 0x3ad   :  { %v2499_v37 = vpack.c.bf16 %v2490_v7, %v2487_v6 }
 0x3af   :  { %v2599_v8 = vadd.bf16 %v2592_v26, %v2499_v37 }
 0x3b1   :  { %3457 = vtanh.bf16 %v2599_v8 }
 0x3bf   :  { %v3458_v57 = vpop.eup %3457 }
 0x3c0   :  { %v2966_v9 = vcombine.low %v3458_v57, %v3458_v57  ;;  %v2970_v38 = vcombine.high %v3458_v57, %v3458_v57 }
 0x3c2   :  { %2647 = vst [vmem:[#allocation7 + $0x18] sm:$0xf] %v2966_v9  ;;  %2651 = vst [vmem:[#allocation7 + $0x34] sm:$0xf] %v2970_v38 }
 0x3c3   :  { %3510 = shalt.err (!%p3507_p0)
}
 0x3c4   :  { %2663 = dma.vmem_to_hbm [thread:$0]  %s2658_s14, 896, %s3713_s9, [#allocation4], %s3529_s19, %s3529_s19, %s3530_s20  }
 0x3c5   :  { %3523 = dma.done.wait [#allocation4], 896  }
 0x3c6   :  { %3524 = vsyncadd [#allocation4], 4294966400 }
 0x3c7   :  { %2667 = vsyncpa [#allocation3], 1 }
 0x3c8   :  { %2668 = vsyncpa [#allocation6], 1 }
 0x3c9   :  { %2669 = vsyncpa [#allocation4], 1 }

</bundles_post_ra>
